<compile_context>
chip_gen: v6e
topology: v6e:2x2x1
jax: 0.10.0
libtpu: 0.0.40
codegen_flags: <defaults>
</compile_context>

<pallas_src>
import jax
import jax.numpy as jnp
from jax.experimental import pallas as pl
from jax.experimental.pallas import tpu as pltpu


# --------------------------------------------------------------------------- #
# Kernels
# --------------------------------------------------------------------------- #
def _fused_kernel(x_ref, w1_ref, b1_ref, w2_ref, b2_ref, o_ref):
    """Collapsed-K path: whole reduction in one MXU dot, then SiLU + dot2."""
    x = x_ref[...].astype(w1_ref.dtype)            # in-kernel operand cast (VPU)
    h = jnp.dot(x, w1_ref[...], preferred_element_type=jnp.float32)
    h = h + b1_ref[...].astype(jnp.float32)
    h = h * jax.nn.sigmoid(h)                      # SiLU in f32 (VPU + EUP)
    out = jnp.dot(h.astype(w2_ref.dtype), w2_ref[...],
                  preferred_element_type=jnp.float32) + b2_ref[...].astype(jnp.float32)
    o_ref[...] = out.astype(o_ref.dtype)


def _kgrid_kernel(x_ref, w1_ref, b1_ref, w2_ref, b2_ref, o_ref, acc_ref):
    """Fallback for very large chem_size: K reduction grid with f32 accumulator."""
    k = pl.program_id(1)

    @pl.when(k == 0)
    def _():
        acc_ref[...] = jnp.zeros_like(acc_ref)

    acc_ref[...] += jnp.dot(x_ref[...].astype(w1_ref.dtype), w1_ref[...],
                            preferred_element_type=jnp.float32)

    @pl.when(k == pl.num_programs(1) - 1)
    def _():
        h = acc_ref[...] + b1_ref[...].astype(jnp.float32)
        h = h * jax.nn.sigmoid(h)                  # SiLU in f32
        out = jnp.dot(h.astype(w2_ref.dtype), w2_ref[...],
                      preferred_element_type=jnp.float32) + b2_ref[...].astype(jnp.float32)
        o_ref[...] = out.astype(o_ref.dtype)


# --------------------------------------------------------------------------- #
# Helpers
# --------------------------------------------------------------------------- #
def _round_up(n, m):
    return ((n + m - 1) // m) * m


def _spec(shape, index_map, buffers=None):
    """BlockSpec with optional explicit pipeline depth (graceful fallback)."""
    if buffers is not None:
        try:
            return pl.BlockSpec(shape, index_map, pipeline_mode=pl.Buffered(buffers))
        except (TypeError, AttributeError):
            pass
    return pl.BlockSpec(shape, index_map)


def _vmem_policy():
    """(budget_bytes, limit_bytes) chosen per TPU generation."""
    try:
        kind = jax.devices()[0].device_kind.lower()
    except Exception:
        kind = ""
    try:
        cap = int(pltpu.get_tpu_info().vmem_capacity_bytes)
    except Exception:
        cap = 0
    roomy = ("v5" in kind) or ("v6" in kind) or cap >= (100 << 20)
    tight = ("v7" in kind) or (0 < cap < (100 << 20))
    if roomy and not tight:
        return 56 << 20, 88 << 20      # v5e/v6e: 128 MiB physical VMEM per TC
    return 22 << 20, 40 << 20          # v7x / unknown: 64 MiB per TC, stay safe


def _choose_tiles(B, tm_cap):
    """Pad B only to a multiple of 8 when possible; pick tm dividing B_pad."""
    b8 = _round_up(B, 8)
    if b8 <= tm_cap:
        return b8, b8                           # single M tile, minimal padding
    t = tm_cap
    while t >= 64:                              # divisor of b8 that is a mult. of 8
        if b8 % t == 0:
            return t, b8
        t -= 8
    return tm_cap, _round_up(B, tm_cap)         # bounded padding (< tm_cap rows)


# --------------------------------------------------------------------------- #
# Wrapper
# --------------------------------------------------------------------------- #
def reaction_encoder(x, w1, b1, w2, b2, *, tm=None, use_bf16_matmul=True,
                     vmem_budget_bytes=None, vmem_limit_bytes=None):
    """x: [B, chem_size]; w1: [chem_size, d_model]; w2: [d_model, d_model]."""
    B, K = x.shape
    Kw, D = w1.shape
    assert Kw == K and w2.shape == (D, D), "weights must be pre-transposed to [in, out]"
    b1 = jnp.reshape(b1, (1, D))                # accept (D,) or (1, D) biases
    b2 = jnp.reshape(b2, (1, D))
    out_dtype = x.dtype

    if use_bf16_matmul:
        # Halves W1/W2 HBM bytes and uses the native bf16 MXU. Callers reusing
        # the encoder should cast & cache the weights once (the casts below are
        # no-ops for pre-cast bf16 weights). x stays in its HBM dtype and is
        # cast per-tile inside the kernel.
        if w1.dtype != jnp.bfloat16:
            w1 = w1.astype(jnp.bfloat16)
        if w2.dtype != jnp.bfloat16:
            w2 = w2.astype(jnp.bfloat16)
    # TODO(synk): optional weight-only int8 (v5e/v6e) / fp8 (v7x) dequant path for
    # another ~2x on the W1-streaming-bound small-batch regime.

    budget, limit = _vmem_policy()
    if vmem_budget_bytes is not None:
        budget = vmem_budget_bytes
    if vmem_limit_bytes is not None:
        limit = vmem_limit_bytes

    # Rows per M tile: 256 only for bf16 operands; f32 h at tm=256 spills vregs
    # around the SiLU, so cap at 128 there (no MXU-shape penalty, BW-bound anyway).
    tm_cap = 256 if use_bf16_matmul else 128
    if tm is None:
        tm, B_pad = _choose_tiles(B, tm_cap)
    else:
        tm = max(8, _round_up(tm, 8))
        B_pad = _round_up(B, tm)
    if B_pad != B:
        x = jnp.pad(x, ((0, B_pad - B), (0, 0)))

    x_isz = jnp.dtype(x.dtype).itemsize
    w_isz = jnp.dtype(w1.dtype).itemsize
    o_isz = jnp.dtype(out_dtype).itemsize

    def vmem_collapsed(k_full):
        return (2 * tm * k_full * x_isz          # x tile (double-buffered)
                + 1 * k_full * D * w_isz         # W1, Buffered(1), resident
                + 1 * D * D * w_isz              # W2, Buffered(1), resident
                + 2 * D * 4                      # b1 + b2
                + 2 * tm * D * o_isz             # out tile (double-buffered)
                + tm * D * 4)                    # live f32 h between the two dots

    def vmem_kgrid(tk, nbuf):
        return (nbuf * tm * tk * x_isz           # streamed x tile
                + nbuf * tk * D * w_isz          # streamed W1 tile
                + 1 * D * D * w_isz              # W2, Buffered(1), resident
                + 2 * D * 4                      # b1 + b2
                + 2 * tm * D * o_isz             # out tile (double-buffered)
                + tm * D * 4)                    # f32 accumulator scratch

    cost = pl.CostEstimate(
        flops=2 * B_pad * D * (K + D),
        transcendentals=B_pad * D,               # sigmoid inside SiLU
        bytes_accessed=(B_pad * K * x_isz + (K * D + D * D) * w_isz
                        + 2 * D * 4 + B_pad * D * o_isz),
    )
    cparams = lambda sem: pltpu.CompilerParams(  # noqa: E731
        dimension_semantics=sem, vmem_limit_bytes=limit)

    if vmem_collapsed(K) <= budget:
        # ------- collapsed-K fast path: single full-K dot per M tile -------
        # TODO(synk): v7x 2-TC split for a size-1 grid needs a cross-core
        # reduction over D for the second matmul; left for a two-call variant.
        out = pl.pallas_call(
            _fused_kernel,
            out_shape=jax.ShapeDtypeStruct((B_pad, D), out_dtype),
            grid_spec=pltpu.PrefetchScalarGridSpec(
                num_scalar_prefetch=0,
                grid=(B_pad // tm,),
                in_specs=[
                    _spec((tm, K), lambda i: (i, 0)),              # x tile
                    _spec((K, D), lambda i: (0, 0), buffers=1),    # W1 (resident)
                    _spec((1, D), lambda i: (0, 0), buffers=1),    # b1
                    _spec((D, D), lambda i: (0, 0), buffers=1),    # W2 (resident)
                    _spec((1, D), lambda i: (0, 0), buffers=1),    # b2
                ],
                out_specs=pl.BlockSpec((tm, D), lambda i: (i, 0)),
            ),
            compiler_params=cparams(("parallel",)),
            cost_estimate=cost,
        )(x, w1, b1, w2, b2)
    else:
        # ------- large-chem_size fallback: K reduction grid, big tk tiles -------
        tk = 2048
        nbuf = 3                                  # deeper buffering on streamed tiles
        while tk > 512 and vmem_kgrid(tk, nbuf) > budget:
            tk //= 2
        if vmem_kgrid(tk, nbuf) > budget:
            nbuf = 2
        K_pad = _round_up(K, tk)
        if K_pad != K:
            x = jnp.pad(x, ((0, 0), (0, K_pad - K)))
            w1 = jnp.pad(w1, ((0, K_pad - K), (0, 0)))
        out = pl.pallas_call(
            _kgrid_kernel,
            out_shape=jax.ShapeDtypeStruct((B_pad, D), out_dtype),
            grid_spec=pltpu.PrefetchScalarGridSpec(
                num_scalar_prefetch=0,
                grid=(B_pad // tm, K_pad // tk),
                in_specs=[
                    _spec((tm, tk), lambda i, k: (i, k), buffers=nbuf),  # x tile
                    _spec((tk, D), lambda i, k: (k, 0), buffers=nbuf),   # W1 tile
                    _spec((1, D), lambda i, k: (0, 0), buffers=1),       # b1
                    _spec((D, D), lambda i, k: (0, 0), buffers=1),       # W2
                    _spec((1, D), lambda i, k: (0, 0), buffers=1),       # b2
                ],
                out_specs=pl.BlockSpec((tm, D), lambda i, k: (i, 0)),
                scratch_shapes=[pltpu.VMEM((tm, D), jnp.float32)],
            ),
            compiler_params=cparams(("parallel", "arbitrary")),
            cost_estimate=cost,
        )(x, w1, b1, w2, b2)

    return out[:B] if B_pad != B else out


def _reference(x, w1, b1, w2, b2):
    h = x @ w1 + jnp.reshape(b1, (1, -1))
    h = h * jax.nn.sigmoid(h)
    return h @ w2 + jnp.reshape(b2, (1, -1))


if __name__ == "__main__":
    # Small shapes consistent with Reaction_encoder(chem_size, d_model):
    B, CHEM, D = 16, 2048, 256

    key = jax.random.PRNGKey(0)
    kx, k1, k2, k3, k4 = jax.random.split(key, 5)

    x = jax.random.normal(kx, (B, CHEM), dtype=jnp.float32)

    # PyTorch-Linear-style init (uniform +/- 1/sqrt(fan_in)); weights stored
    # already transposed to [in, out]; 1-D biases as PyTorch would give.
    bound1 = 1.0 / jnp.sqrt(CHEM)
    w1 = jax.random.uniform(k1, (CHEM, D), jnp.float32, -bound1, bound1)
    b1 = jax.random.uniform(k2, (D,), jnp.float32, -bound1, bound1)
    bound2 = 1.0 / jnp.sqrt(D)
    w2 = jax.random.uniform(k3, (D, D), jnp.float32, -bound2, bound2)
    b2 = jax.random.uniform(k4, (D,), jnp.float32, -bound2, bound2)

    ref = _reference(x, w1, b1, w2, b2)

    # Default path: bf16 MXU operands, collapsed-K grid (looser tolerance).
    out = jax.block_until_ready(reaction_encoder(x, w1, b1, w2, b2))
    assert out.shape == (B, D)
    assert jnp.allclose(out, ref, atol=3e-2, rtol=3e-2), "bf16 fused path mismatch"

    # Exact f32 path (tight tolerance, tm capped at 128).
    out_f32 = jax.block_until_ready(
        reaction_encoder(x, w1, b1, w2, b2, use_bf16_matmul=False))
    assert jnp.allclose(out_f32, ref, atol=1e-4, rtol=1e-4), "f32 fused path mismatch"

    # Exercise the large-chem_size fallback (K reduction grid) by forcing a tiny
    # VMEM budget; must also match the reference.
    out_k = jax.block_until_ready(
        reaction_encoder(x, w1, b1, w2, b2, vmem_budget_bytes=1))
    assert jnp.allclose(out_k, ref, atol=3e-2, rtol=3e-2), "K-grid path mismatch"

    # Odd batch exercises the tightened (multiple-of-8) padding path.
    x_odd = x[:13]
    ref_odd = _reference(x_odd, w1, b1, w2, b2)
    out_odd = jax.block_until_ready(reaction_encoder(x_odd, w1, b1, w2, b2))
    assert out_odd.shape == (13, D)
    assert jnp.allclose(out_odd, ref_odd, atol=3e-2, rtol=3e-2), "odd-batch mismatch"

    print("KERNEL_OK")
</pallas_src>

<mosaic_0001>
module attributes {stable_mosaic.version = 11 : i64} {
  func.func @_fused_kernel(%arg0: i32, %arg1: memref<16x2048xf32, #tpu.memory_space<vmem>>, %arg2: memref<2048x256xbf16, #tpu.memory_space<vmem>>, %arg3: memref<1x256xf32, #tpu.memory_space<vmem>>, %arg4: memref<256x256xbf16, #tpu.memory_space<vmem>>, %arg5: memref<1x256xf32, #tpu.memory_space<vmem>>, %arg6: memref<16x256xf32, #tpu.memory_space<vmem>>) attributes {dimension_semantics = [#tpu.dimension_semantics<parallel>], iteration_bounds = array<i64: 1>, scalar_prefetch = 0 : i64, scratch_operands = 0 : i64, tpu.core_type = #tpu.core_type<tc>, window_params = [{transform_indices = @transform_0, window_bounds = array<i64: 16, 2048>}, {pipeline_mode = #tpu.pipeline_mode<synchronous>, transform_indices = @transform_1, window_bounds = array<i64: 2048, 256>}, {pipeline_mode = #tpu.pipeline_mode<synchronous>, transform_indices = @transform_2, window_bounds = array<i64: 1, 256>}, {pipeline_mode = #tpu.pipeline_mode<synchronous>, transform_indices = @transform_3, window_bounds = array<i64: 256, 256>}, {pipeline_mode = #tpu.pipeline_mode<synchronous>, transform_indices = @transform_4, window_bounds = array<i64: 1, 256>}, {transform_indices = @transform_5, window_bounds = array<i64: 16, 256>}]} {
    %c0 = arith.constant 0 : index
    %c0_0 = arith.constant 0 : index
    %0 = vector.load %arg1[%c0, %c0_0] : memref<16x2048xf32, #tpu.memory_space<vmem>>, vector<16x2048xf32>
    %1 = arith.truncf %0 : vector<16x2048xf32> to vector<16x2048xbf16>
    %c0_1 = arith.constant 0 : index
    %c0_2 = arith.constant 0 : index
    %2 = vector.load %arg2[%c0_1, %c0_2] : memref<2048x256xbf16, #tpu.memory_space<vmem>>, vector<2048x256xbf16>
    %cst = arith.constant dense<0.000000e+00> : vector<16x256xf32>
    %3 = tpu.matmul %1, %2, %cst {dimension_numbers = #tpu.dot_dimension_numbers<[1], [0], [0], [1], [0, 0, 1, 1], [], []>} : vector<16x2048xbf16>, vector<2048x256xbf16>, vector<16x256xf32> -> vector<16x256xf32>
    %c0_3 = arith.constant 0 : index
    %c0_4 = arith.constant 0 : index
    %4 = vector.load %arg3[%c0_3, %c0_4] : memref<1x256xf32, #tpu.memory_space<vmem>>, vector<1x256xf32>
    %5 = vector.broadcast %4 : vector<1x256xf32> to vector<16x256xf32>
    %6 = arith.addf %3, %5 : vector<16x256xf32>
    %7 = arith.negf %6 : vector<16x256xf32>
    %8 = math.exp %7 : vector<16x256xf32>
    %cst_5 = arith.constant 1.000000e+00 : f32
    %9 = vector.broadcast %cst_5 : f32 to vector<16x256xf32>
    %10 = arith.addf %9, %8 : vector<16x256xf32>
    %11 = arith.divf %9, %10 : vector<16x256xf32>
    %12 = arith.mulf %6, %11 : vector<16x256xf32>
    %13 = arith.truncf %12 : vector<16x256xf32> to vector<16x256xbf16>
    %c0_6 = arith.constant 0 : index
    %c0_7 = arith.constant 0 : index
    %14 = vector.load %arg4[%c0_6, %c0_7] : memref<256x256xbf16, #tpu.memory_space<vmem>>, vector<256x256xbf16>
    %cst_8 = arith.constant dense<0.000000e+00> : vector<16x256xf32>
    %15 = tpu.matmul %13, %14, %cst_8 {dimension_numbers = #tpu.dot_dimension_numbers<[1], [0], [0], [1], [0, 0, 1, 1], [], []>} : vector<16x256xbf16>, vector<256x256xbf16>, vector<16x256xf32> -> vector<16x256xf32>
    %c0_9 = arith.constant 0 : index
    %c0_10 = arith.constant 0 : index
    %16 = vector.load %arg5[%c0_9, %c0_10] : memref<1x256xf32, #tpu.memory_space<vmem>>, vector<1x256xf32>
    %17 = vector.broadcast %16 : vector<1x256xf32> to vector<16x256xf32>
    %18 = arith.addf %15, %17 : vector<16x256xf32>
    %c0_11 = arith.constant 0 : index
    %c0_12 = arith.constant 0 : index
    %19 = vector.load %arg6[%c0_11, %c0_12] : memref<16x256xf32, #tpu.memory_space<vmem>>, vector<16x256xf32>
    tpu.vector_store %arg6[%c0_11, %c0_12], %18 {strides = array<i32>} : memref<16x256xf32, #tpu.memory_space<vmem>>, vector<16x256xf32>,
    return
  }
  func.func @transform_0(%arg0: i32) -> (i32, i32) {
    %c0_i32 = arith.constant 0 : i32
    %c0_i32_0 = arith.constant 0 : i32
    return %arg0, %c0_i32 : i32, i32
  }
  func.func @transform_1(%arg0: i32) -> (i32, i32) {
    %c0_i32 = arith.constant 0 : i32
    %c0_i32_0 = arith.constant 0 : i32
    %c0_i32_1 = arith.constant 0 : i32
    return %c0_i32, %c0_i32_0 : i32, i32
  }
  func.func @transform_2(%arg0: i32) -> (i32, i32) {
    %c0_i32 = arith.constant 0 : i32
    %c0_i32_0 = arith.constant 0 : i32
    %c0_i32_1 = arith.constant 0 : i32
    return %c0_i32, %c0_i32_0 : i32, i32
  }
  func.func @transform_3(%arg0: i32) -> (i32, i32) {
    %c0_i32 = arith.constant 0 : i32
    %c0_i32_0 = arith.constant 0 : i32
    %c0_i32_1 = arith.constant 0 : i32
    return %c0_i32, %c0_i32_0 : i32, i32
  }
  func.func @transform_4(%arg0: i32) -> (i32, i32) {
    %c0_i32 = arith.constant 0 : i32
    %c0_i32_0 = arith.constant 0 : i32
    %c0_i32_1 = arith.constant 0 : i32
    return %c0_i32, %c0_i32_0 : i32, i32
  }
  func.func @transform_5(%arg0: i32) -> (i32, i32) {
    %c0_i32 = arith.constant 0 : i32
    %c0_i32_0 = arith.constant 0 : i32
    return %arg0, %c0_i32 : i32, i32
  }
}

</mosaic_0001>

<bundles_post_ra>
// kernel: tpu_custom_call.1
= control target key start
LH: loop header
LB: loop body
LE: loop exit
PB: predicated region body
PF: predicated region fallthrough
CT: control target
= control target key end

     0   :  { %10 = vsyncpa [#allocation3], 0  ;;  %s3205_s0 = inlined_call_operand.hbm [shape: f32[16,2048], index: 0, kind: input, shape index: {}]   ;;  %s3206_s1 = inlined_call_operand.hbm [shape: bf16[2048,256], index: 1, kind: input, shape index: {}]   ;;  %s3207_s2 = inlined_call_operand.vmem [shape: f32[1,256], index: 2, kind: input, shape index: {}]   ;;  %s3208_s3 = inlined_call_operand.hbm [shape: bf16[256,256], index: 3, kind: input, shape index: {}]   ;;  %s3209_s4 = inlined_call_operand.vmem [shape: f32[1,256], index: 4, kind: input, shape index: {}]   ;;  %s3210_s5 = inlined_call_operand.hbm [shape: f32[16,256], index: 5, kind: output, shape index: {}]  }
   0x1   :  { %11 = vsyncpa [#allocation6], 0 }
   0x2   :  { %12 = vsyncpa [#allocation4], 0  ;;  %s3136_s18 = smov [#allocation5]  }
   0x3   :  { %s30_s19 = sshll.u32 %s3136_s18, 4  ;;  %s31_s19 = int_to_ptr.vmem [resolvable:$true] %s30_s19 }
   0x4   :  { %s3058_s20 = scalar_lea.vmem %s31_s19, 32768  ;;  %p3063_p1 = scmp.lt.s32.totalorder %s31_s19, %s31_s19 }
   0x5   :  { %p3059_p0 = scmp.ne.s32.totalorder %s31_s19, %s3058_s20  ;;  %p3064_p2 = scmp.lt.s32.totalorder %s3058_s20, %s3058_s20 }
   0x7   :  { %p3065_p3 = por %p3064_p2, %p3063_p1 }
   0x9   :  { %p3066_p4 = pnand %p3065_p3, %p3059_p0 }
   0xb   :  { %3069 = shalt.err (!%p3066_p4)
}
   0xc   :  { %s3137_s21 = smov 128   ;;  %s3138_s22 = smov 8  }
   0xd   :  { %36 = dma.hbm_to_vmem [thread:$0]  %s3206_s1, 32768, %s31_s19, [#allocation6], %s3137_s21, %s3137_s21, %s3138_s22  }
   0xe   :  { %s3139_s25 = smov [#allocation2]  }
   0xf   :  { %s18_s26 = sshll.u32 %s3139_s25, 4  ;;  %s19_s26 = int_to_ptr.vmem [resolvable:$true] %s18_s26 }
  0x10   :  { %s3078_s27 = scalar_lea.vmem %s19_s26, 4096  ;;  %p3083_p6 = scmp.lt.s32.totalorder %s19_s26, %s19_s26 }
  0x11   :  { %p3079_p5 = scmp.ne.s32.totalorder %s19_s26, %s3078_s27  ;;  %p3084_p7 = scmp.lt.s32.totalorder %s3078_s27, %s3078_s27 }
  0x13   :  { %p3085_p8 = por %p3084_p7, %p3083_p6 }
  0x15   :  { %p3086_p9 = pnand %p3085_p8, %p3079_p5 }
  0x17   :  { %3089 = shalt.err (!%p3086_p9)
}
  0x18   :  { %s3140_s28 = smov 2048   ;;  %s3141_s6 = smov [#allocation7]  }
  0x19   :  { %24 = dma.hbm_to_vmem [thread:$0]  %s3205_s0, 4096, %s19_s26, [#allocation3], %s3140_s28, %s3140_s28, %s3137_s21  }
  0x1a   :  { %s44_s7 = sshll.u32 %s3141_s6, 4  ;;  %s45_s7 = int_to_ptr.vmem [resolvable:$true] %s44_s7 }
  0x1b   :  { %s3098_s8 = scalar_lea.vmem %s45_s7, 4096  ;;  %p3103_p11 = scmp.lt.s32.totalorder %s45_s7, %s45_s7 }
  0x1c   :  { %p3099_p10 = scmp.ne.s32.totalorder %s45_s7, %s3098_s8  ;;  %p3104_p12 = scmp.lt.s32.totalorder %s3098_s8, %s3098_s8 }
  0x1e   :  { %p3105_p13 = por %p3104_p12, %p3103_p11 }
  0x20   :  { %p3106_p0 = pnand %p3105_p13, %p3099_p10 }
  0x22   :  { %3109 = shalt.err (!%p3106_p0)
}
  0x23   :  { %50 = dma.hbm_to_vmem [thread:$0]  %s3208_s3, 4096, %s45_s7, [#allocation6], %s3137_s21, %s3137_s21, %s3138_s22  }
  0x24   :  { %3130 = dma.done.wait [#allocation3], 4096  }
  0x25   :  { %3131 = vsyncadd [#allocation3], 4294963200 }
  0x26   :  { %3132 = dma.done.wait [#allocation6], 36864  }
  0x27   :  { %3133 = vsyncadd [#allocation6], 4294930432  ;;  %v2602_v0 = vld [vmem:[#allocation5 + $0x74] ss:$8 sps:$4 sm:$0xff]   ;;  %v2606_v2 = vld [vmem:[#allocation5 + $0x70] ss:$8 sps:$4 sm:$0xff]  }
  0x28   :  { %v2604_v1 = vld [vmem:[#allocation5 + $0x174] ss:$8 sps:$4 sm:$0xff]   ;;  %1658 = vmatprep.subr.bf16.mxu0 %v2602_v0  ;;  %v2607_v3 = vld [vmem:[#allocation5 + $0x170] ss:$8 sps:$4 sm:$0xff]   ;;  %v2608_v4 = vld [vmem:[#allocation5 + $0x64] ss:$8 sps:$4 sm:$0xff]  }
  0x29   :  { %1701 = vmatprep.subr.bf16.mxu1 %v2604_v1  ;;  %1659 = vmatpush1.bf16.msra.mxu0 %v2606_v2  ;;  %v2610_v5 = vld [vmem:[#allocation5 + $0x164] ss:$8 sps:$4 sm:$0xff]   ;;  %v2612_v6 = vld [vmem:[#allocation5 + $0x60] ss:$8 sps:$4 sm:$0xff]   ;;  %v2614_v8 = vld [vmem:[#allocation5 + $0x54] ss:$8 sps:$4 sm:$0xff]  }
  0x2a   :  { %1702 = vmatpush1.bf16.msra.mxu1 %v2607_v3  ;;  %1660 = vmatprep.subr.bf16.mxu0 %v2608_v4  ;;  %v2613_v7 = vld [vmem:[#allocation5 + $0x160] ss:$8 sps:$4 sm:$0xff]   ;;  %v2616_v9 = vld [vmem:[#allocation5 + $0x154] ss:$8 sps:$4 sm:$0xff]   ;;  %v2618_v10 = vld [vmem:[#allocation5 + $0x50] ss:$8 sps:$4 sm:$0xff]  }
  0x2b   :  { %1703 = vmatprep.subr.bf16.mxu1 %v2610_v5  ;;  %v2619_v11 = vld [vmem:[#allocation5 + $0x150] ss:$8 sps:$4 sm:$0xff]   ;;  %v2620_v12 = vld [vmem:[#allocation5 + $0x44] ss:$8 sps:$4 sm:$0xff]   ;;  %v2624_v14 = vld [vmem:[#allocation5 + $0x40] ss:$8 sps:$4 sm:$0xff]  }
  0x2c   :  { %v2622_v13 = vld [vmem:[#allocation5 + $0x144] ss:$8 sps:$4 sm:$0xff]   ;;  %v2625_v15 = vld [vmem:[#allocation5 + $0x140] ss:$8 sps:$4 sm:$0xff]   ;;  %v2626_v16 = vld [vmem:[#allocation5 + $0x34] ss:$8 sps:$4 sm:$0xff]  }
  0x2d   :  { %1661 = vmatpush1.bf16.msra.mxu0 %v2612_v6  ;;  %v2628_v17 = vld [vmem:[#allocation5 + $0x134] ss:$8 sps:$4 sm:$0xff]   ;;  %v2630_v18 = vld [vmem:[#allocation5 + $0x30] ss:$8 sps:$4 sm:$0xff]   ;;  %v2632_v20 = vld [vmem:[#allocation5 + $0x24] ss:$8 sps:$4 sm:$0xff]  }
  0x2e   :  { %1704 = vmatpush1.bf16.msra.mxu1 %v2613_v7  ;;  %1662 = vmatprep.subr.bf16.mxu0 %v2614_v8  ;;  %v2631_v19 = vld [vmem:[#allocation5 + $0x130] ss:$8 sps:$4 sm:$0xff]   ;;  %v2634_v21 = vld [vmem:[#allocation5 + $0x124] ss:$8 sps:$4 sm:$0xff]   ;;  %v2636_v22 = vld [vmem:[#allocation5 + $0x20] ss:$8 sps:$4 sm:$0xff]  }
  0x2f   :  { %1705 = vmatprep.subr.bf16.mxu1 %v2616_v9  ;;  %v2637_v23 = vld [vmem:[#allocation5 + $0x120] ss:$8 sps:$4 sm:$0xff]   ;;  %v2638_v24 = vld [vmem:[#allocation5 + $0x14] ss:$8 sps:$4 sm:$0xff]   ;;  %v2642_v26 = vld [vmem:[#allocation5 + $0x10] ss:$8 sps:$4 sm:$0xff]  }
  0x30   :  { %v2640_v25 = vld [vmem:[#allocation5 + $0x114] ss:$8 sps:$4 sm:$0xff]   ;;  %v2643_v27 = vld [vmem:[#allocation5 + $0x110] ss:$8 sps:$4 sm:$0xff]   ;;  %v2644_v28 = vld [vmem:[#allocation5 + $0x4] ss:$8 sps:$4 sm:$0xff]  }
  0x31   :  { %1663 = vmatpush1.bf16.msra.mxu0 %v2618_v10  ;;  %v2646_v29 = vld [vmem:[#allocation5 + $0x104] ss:$8 sps:$4 sm:$0xff]   ;;  %v2648_v30 = vld [vmem:[#allocation5] ss:$8 sps:$4 sm:$0xff]   ;;  %v2650_v32 = vld [vmem:[#allocation5 + $0xf4] ss:$8 sps:$4 sm:$0xff]  }
  0x32   :  { %1706 = vmatpush1.bf16.msra.mxu1 %v2619_v11  ;;  %1664 = vmatprep.subr.bf16.mxu0 %v2620_v12  ;;  %v2649_v31 = vld [vmem:[#allocation5 + $0x100] ss:$8 sps:$4 sm:$0xff]   ;;  %v2652_v33 = vld [vmem:[#allocation5 + $0x1f4] ss:$8 sps:$4 sm:$0xff]   ;;  %v2654_v34 = vld [vmem:[#allocation5 + $0xf0] ss:$8 sps:$4 sm:$0xff]  }
  0x33   :  { %1707 = vmatprep.subr.bf16.mxu1 %v2622_v13  ;;  %v2655_v35 = vld [vmem:[#allocation5 + $0x1f0] ss:$8 sps:$4 sm:$0xff]   ;;  %v2656_v36 = vld [vmem:[#allocation5 + $0xe4] ss:$8 sps:$4 sm:$0xff]   ;;  %v2660_v38 = vld [vmem:[#allocation5 + $0xe0] ss:$8 sps:$4 sm:$0xff]  }
  0x34   :  { %v2658_v37 = vld [vmem:[#allocation5 + $0x1e4] ss:$8 sps:$4 sm:$0xff]   ;;  %v2661_v39 = vld [vmem:[#allocation5 + $0x1e0] ss:$8 sps:$4 sm:$0xff]   ;;  %v2662_v40 = vld [vmem:[#allocation5 + $0xd4] ss:$8 sps:$4 sm:$0xff]  }
  0x35   :  { %1665 = vmatpush1.bf16.msra.mxu0 %v2624_v14  ;;  %v2664_v41 = vld [vmem:[#allocation5 + $0x1d4] ss:$8 sps:$4 sm:$0xff]   ;;  %v2666_v42 = vld [vmem:[#allocation5 + $0xd0] ss:$8 sps:$4 sm:$0xff]   ;;  %v2668_v44 = vld [vmem:[#allocation5 + $0xc4] ss:$8 sps:$4 sm:$0xff]  }
  0x36   :  { %1708 = vmatpush1.bf16.msra.mxu1 %v2625_v15  ;;  %1666 = vmatprep.subr.bf16.mxu0 %v2626_v16  ;;  %v2667_v43 = vld [vmem:[#allocation5 + $0x1d0] ss:$8 sps:$4 sm:$0xff]   ;;  %v2670_v45 = vld [vmem:[#allocation5 + $0x1c4] ss:$8 sps:$4 sm:$0xff]   ;;  %v2672_v50 = vld [vmem:[#allocation5 + $0xc0] ss:$8 sps:$4 sm:$0xff]  }
  0x37   :  { %1709 = vmatprep.subr.bf16.mxu1 %v2628_v17  ;;  %v63_v46 = vld [vmem:[#allocation2 + $0x8] sm:$0xff]  ;;  %v65_v48 = vld [vmem:[#allocation2 + $0x18] sm:$0xff]  ;;  %v62_v6 = vld [vmem:[#allocation2] sm:$0xff]  ;;  %s3142_s11 = smov [#allocation8]  }
  0x38   :  { %v79_v47 = vld [vmem:[#allocation2 + $0x88] sm:$0xff]  ;;  %v81_v49 = vld [vmem:[#allocation2 + $0x98] sm:$0xff]  ;;  %v78_v7 = vld [vmem:[#allocation2 + $0x80] sm:$0xff]  ;;  %s2288_s12 = sshll.u32 %s3142_s11, 4  ;;  %s2289_s12 = int_to_ptr.vmem [resolvable:$true] %s2288_s12 }
  0x39   :  { %1667 = vmatpush1.bf16.msra.mxu0 %v2630_v18  ;;  %v2673_v51 = vld [vmem:[#allocation5 + $0x1c0] ss:$8 sps:$4 sm:$0xff]   ;;  %v2674_v52 = vld [vmem:[#allocation5 + $0xb4] ss:$8 sps:$4 sm:$0xff]   ;;  %v95_v53 = vpack.c.bf16 %v79_v47, %v63_v46  ;;  %v97_v54 = vpack.c.bf16 %v81_v49, %v65_v48  ;;  %v2678_v56 = vld [vmem:[#allocation5 + $0xb0] ss:$8 sps:$4 sm:$0xff]   ;;  %v94_v12 = vpack.c.bf16 %v78_v7, %v62_v6  ;;  %p3115_p2 = scmp.lt.s32.totalorder %s2289_s12, %s2289_s12 }
  0x3a   :  { %1710 = vmatpush1.bf16.msra.mxu1 %v2631_v19  ;;  %1668 = vmatprep.subr.bf16.mxu0 %v2632_v20  ;;  %v2676_v55 = vld [vmem:[#allocation5 + $0x1b4] ss:$8 sps:$4 sm:$0xff]   ;;  %v2679_v57 = vld [vmem:[#allocation5 + $0x1b0] ss:$8 sps:$4 sm:$0xff]   ;;  %v2680_v58 = vld [vmem:[#allocation5 + $0xa4] ss:$8 sps:$4 sm:$0xff]  }
  0x3b   :  { %1711 = vmatprep.subr.bf16.mxu1 %v2634_v21  ;;  %1690 = vmatprep.mubr.bf16.mxu0 %v95_v53  ;;  %v2682_v59 = vld [vmem:[#allocation5 + $0x1a4] ss:$8 sps:$4 sm:$0xff]   ;;  %v2684_v60 = vld [vmem:[#allocation5 + $0xa0] ss:$8 sps:$4 sm:$0xff]   ;;  %v2686_v62 = vld [vmem:[#allocation5 + $0x94] ss:$8 sps:$4 sm:$0xff]  }
  0x3c   :  { %1733 = vmatprep.mubr.bf16.mxu1 %v97_v54  ;;  %v2685_v61 = vld [vmem:[#allocation5 + $0x1a0] ss:$8 sps:$4 sm:$0xff]   ;;  %v2688_v63 = vld [vmem:[#allocation5 + $0x194] ss:$8 sps:$4 sm:$0xff]   ;;  %v2690_v0 = vld [vmem:[#allocation5 + $0x90] ss:$8 sps:$4 sm:$0xff]  }
  0x3d   :  { %1669 = vmatpush1.bf16.msra.mxu0 %v2636_v22  ;;  %v2691_v1 = vld [vmem:[#allocation5 + $0x190] ss:$8 sps:$4 sm:$0xff]   ;;  %v2692_v2 = vld [vmem:[#allocation5 + $0x84] ss:$8 sps:$4 sm:$0xff]   ;;  %v2696_v4 = vld [vmem:[#allocation5 + $0x80] ss:$8 sps:$4 sm:$0xff]  }
  0x3e   :  { %1712 = vmatpush1.bf16.msra.mxu1 %v2637_v23  ;;  %1670 = vmatprep.subr.bf16.mxu0 %v2638_v24  ;;  %v2694_v3 = vld [vmem:[#allocation5 + $0x184] ss:$8 sps:$4 sm:$0xff]   ;;  %v2697_v5 = vld [vmem:[#allocation5 + $0x180] ss:$8 sps:$4 sm:$0xff]   ;;  %v64_v8 = vld [vmem:[#allocation2 + $0x10] sm:$0xff] }
  0x3f   :  { %1713 = vmatprep.subr.bf16.mxu1 %v2640_v25  ;;  %v80_v9 = vld [vmem:[#allocation2 + $0x90] sm:$0xff]  ;;  %v2706_v16 = vld [vmem:[#allocation5 + $0x264] ss:$8 sps:$4 sm:$0xff]   ;;  %v2704_v18 = vld [vmem:[#allocation5 + $0x260] ss:$8 sps:$4 sm:$0xff]  }
  0x40   :  { %v2700_v10 = vld [vmem:[#allocation5 + $0x274] ss:$8 sps:$4 sm:$0xff]   ;;  %v96_v13 = vpack.c.bf16 %v80_v9, %v64_v8  ;;  %v2698_v14 = vld [vmem:[#allocation5 + $0x270] ss:$8 sps:$4 sm:$0xff]   ;;  %v2709_v17 = vld [vmem:[#allocation5 + $0x364] ss:$8 sps:$4 sm:$0xff]  }
  0x41   :  { %1671 = vmatpush1.bf16.msra.mxu0 %v2642_v26  ;;  %v2703_v11 = vld [vmem:[#allocation5 + $0x374] ss:$8 sps:$4 sm:$0xff]   ;;  %v2701_v15 = vld [vmem:[#allocation5 + $0x370] ss:$8 sps:$4 sm:$0xff]   ;;  %v2707_v19 = vld [vmem:[#allocation5 + $0x360] ss:$8 sps:$4 sm:$0xff]  }
  0x42   :  { %1714 = vmatpush1.bf16.msra.mxu1 %v2643_v27  ;;  %1672 = vmatprep.subr.bf16.mxu0 %v2644_v28  ;;  %v2712_v20 = vld [vmem:[#allocation5 + $0x254] ss:$8 sps:$4 sm:$0xff]   ;;  %v2710_v22 = vld [vmem:[#allocation5 + $0x250] ss:$8 sps:$4 sm:$0xff]   ;;  %v2718_v24 = vld [vmem:[#allocation5 + $0x244] ss:$8 sps:$4 sm:$0xff]  }
  0x43   :  { %1715 = vmatprep.subr.bf16.mxu1 %v2646_v29  ;;  %v2715_v21 = vld [vmem:[#allocation5 + $0x354] ss:$8 sps:$4 sm:$0xff]   ;;  %v2713_v23 = vld [vmem:[#allocation5 + $0x350] ss:$8 sps:$4 sm:$0xff]   ;;  %v2721_v25 = vld [vmem:[#allocation5 + $0x344] ss:$8 sps:$4 sm:$0xff]  }
  0x44   :  { %v2716_v26 = vld [vmem:[#allocation5 + $0x240] ss:$8 sps:$4 sm:$0xff]   ;;  %v2724_v28 = vld [vmem:[#allocation5 + $0x234] ss:$8 sps:$4 sm:$0xff]   ;;  %v2749_v53 = vld [vmem:[#allocation5 + $0x3f0] ss:$8 sps:$4 sm:$0xff]  }
  0x45   :  { %1673 = vmatpush1.bf16.msra.mxu0 %v2648_v30  ;;  %v2719_v27 = vld [vmem:[#allocation5 + $0x340] ss:$8 sps:$4 sm:$0xff]   ;;  %v2727_v29 = vld [vmem:[#allocation5 + $0x334] ss:$8 sps:$4 sm:$0xff]   ;;  %v2722_v30 = vld [vmem:[#allocation5 + $0x230] ss:$8 sps:$4 sm:$0xff]  }
  0x46   :  { %1716 = vmatpush1.bf16.msra.mxu1 %v2649_v31  ;;  %1674 = vmatprep.subr.bf16.mxu0 %v2650_v32  ;;  %v2725_v31 = vld [vmem:[#allocation5 + $0x330] ss:$8 sps:$4 sm:$0xff]   ;;  %v2730_v32 = vld [vmem:[#allocation5 + $0x224] ss:$8 sps:$4 sm:$0xff]   ;;  %v2740_v48 = vld [vmem:[#allocation5 + $0x200] ss:$8 sps:$4 sm:$0xff]  }
  0x47   :  { %1717 = vmatprep.subr.bf16.mxu1 %v2652_v33  ;;  %v2733_v33 = vld [vmem:[#allocation5 + $0x324] ss:$8 sps:$4 sm:$0xff]   ;;  %v85_v46 = vld [vmem:[#allocation2 + $0xb8] sm:$0xff]  ;;  %v2743_v49 = vld [vmem:[#allocation5 + $0x300] ss:$8 sps:$4 sm:$0xff]  }
  0x48   :  { %v2754_v54 = vld [vmem:[#allocation5 + $0x2e4] ss:$8 sps:$4 sm:$0xff]   ;;  %v2776_v8 = vld [vmem:[#allocation5 + $0x2a0] ss:$8 sps:$4 sm:$0xff]  }
  0x49   :  { %1675 = vmatpush2.bf16.msra.mxu0 %v2654_v34  ;;  %v2728_v34 = vld [vmem:[#allocation5 + $0x220] ss:$8 sps:$4 sm:$0xff]   ;;  %v2778_v6 = vld [vmem:[#allocation5 + $0x2a4] ss:$8 sps:$4 sm:$0xff]  }
  0x4a   :  { %1718 = vmatpush2.bf16.msra.mxu1 %v2655_v35  ;;  %1676 = vmatprep.subr.bf16.mxu0 %v2656_v36  ;;  %v2731_v35 = vld [vmem:[#allocation5 + $0x320] ss:$8 sps:$4 sm:$0xff]   ;;  %v2736_v36 = vld [vmem:[#allocation5 + $0x214] ss:$8 sps:$4 sm:$0xff]   ;;  %v2781_v7 = vld [vmem:[#allocation5 + $0x3a4] ss:$8 sps:$4 sm:$0xff]  }
  0x4b   :  { %1719 = vmatprep.subr.bf16.mxu1 %v2658_v37  ;;  %v2739_v37 = vld [vmem:[#allocation5 + $0x314] ss:$8 sps:$4 sm:$0xff]   ;;  %v2779_v9 = vld [vmem:[#allocation5 + $0x3a0] ss:$8 sps:$4 sm:$0xff]  }
  0x4d   :  { %1677 = vmatpush2.bf16.msra.mxu0 %v2660_v38  ;;  %v2734_v38 = vld [vmem:[#allocation5 + $0x210] ss:$8 sps:$4 sm:$0xff]  }
  0x4e   :  { %1720 = vmatpush2.bf16.msra.mxu1 %v2661_v39  ;;  %1678 = vmatprep.subr.bf16.mxu0 %v2662_v40  ;;  %v2737_v39 = vld [vmem:[#allocation5 + $0x310] ss:$8 sps:$4 sm:$0xff]   ;;  %v67_v40 = vld [vmem:[#allocation2 + $0x28] sm:$0xff] }
  0x4f   :  { %1721 = vmatprep.subr.bf16.mxu1 %v2664_v41  ;;  %v83_v41 = vld [vmem:[#allocation2 + $0xa8] sm:$0xff] }
  0x51   :  { %1679 = vmatpush2.bf16.msra.mxu0 %v2666_v42  ;;  %v69_v42 = vld [vmem:[#allocation2 + $0x38] sm:$0xff] }
  0x52   :  { %1722 = vmatpush2.bf16.msra.mxu1 %v2667_v43  ;;  %1680 = vmatprep.subr.bf16.mxu0 %v2668_v44  ;;  %v2742_v43 = vld [vmem:[#allocation5 + $0x204] ss:$8 sps:$4 sm:$0xff]   ;;  %v101_v47 = vpack.c.bf16 %v85_v46, %v69_v42  ;;  %v2820_v46 = vld [vmem:[#allocation5 + $0x434] ss:$8 sps:$4 sm:$0xff]  }
  0x53   :  { %1723 = vmatprep.subr.bf16.mxu1 %v2670_v45  ;;  %v2745_v44 = vld [vmem:[#allocation5 + $0x304] ss:$8 sps:$4 sm:$0xff]   ;;  %v99_v45 = vpack.c.bf16 %v83_v41, %v67_v40  ;;  %v2809_v40 = vld [vmem:[#allocation5 + $0x550] ss:$8 sps:$4 sm:$0xff]  }
  0x54   :  { %v2814_v42 = vld [vmem:[#allocation5 + $0x444] ss:$8 sps:$4 sm:$0xff]  }
  0x55   :  { %1681 = vmatpush2.bf16.msra.mxu0 %v2672_v50  ;;  %v2748_v50 = vld [vmem:[#allocation5 + $0x2f4] ss:$8 sps:$4 sm:$0xff]  }
  0x56   :  { %1724 = vmatpush2.bf16.msra.mxu1 %v2673_v51  ;;  %1682 = vmatprep.subr.bf16.mxu0 %v2674_v52  ;;  %v2751_v51 = vld [vmem:[#allocation5 + $0x3f4] ss:$8 sps:$4 sm:$0xff]   ;;  %v2746_v52 = vld [vmem:[#allocation5 + $0x2f0] ss:$8 sps:$4 sm:$0xff]  }
  0x57   :  { %1725 = vmatprep.subr.bf16.mxu1 %v2676_v55  ;;  %v2757_v55 = vld [vmem:[#allocation5 + $0x3e4] ss:$8 sps:$4 sm:$0xff]  }
  0x59   :  { %1683 = vmatpush2.bf16.msra.mxu0 %v2678_v56  ;;  %v2752_v56 = vld [vmem:[#allocation5 + $0x2e0] ss:$8 sps:$4 sm:$0xff]  }
  0x5a   :  { %1726 = vmatpush2.bf16.msra.mxu1 %v2679_v57  ;;  %1684 = vmatprep.subr.bf16.mxu0 %v2680_v58  ;;  %v2755_v57 = vld [vmem:[#allocation5 + $0x3e0] ss:$8 sps:$4 sm:$0xff]   ;;  %v2760_v58 = vld [vmem:[#allocation5 + $0x2d4] ss:$8 sps:$4 sm:$0xff]  }
  0x5b   :  { %1727 = vmatprep.subr.bf16.mxu1 %v2682_v59  ;;  %v2763_v59 = vld [vmem:[#allocation5 + $0x3d4] ss:$8 sps:$4 sm:$0xff]  }
  0x5d   :  { %1685 = vmatpush2.bf16.msra.mxu0 %v2684_v60  ;;  %v2758_v60 = vld [vmem:[#allocation5 + $0x2d0] ss:$8 sps:$4 sm:$0xff]  }
  0x5e   :  { %1728 = vmatpush2.bf16.msra.mxu1 %v2685_v61  ;;  %1686 = vmatprep.subr.bf16.mxu0 %v2686_v62  ;;  %v2761_v61 = vld [vmem:[#allocation5 + $0x3d0] ss:$8 sps:$4 sm:$0xff]   ;;  %v2766_v62 = vld [vmem:[#allocation5 + $0x2c4] ss:$8 sps:$4 sm:$0xff]  }
  0x5f   :  { %1729 = vmatprep.subr.bf16.mxu1 %v2688_v63  ;;  %v2769_v63 = vld [vmem:[#allocation5 + $0x3c4] ss:$8 sps:$4 sm:$0xff]  }
  0x61   :  { %1687 = vmatpush2.bf16.msra.mxu0 %v2690_v0  ;;  %v2764_v0 = vld [vmem:[#allocation5 + $0x2c0] ss:$8 sps:$4 sm:$0xff]  }
  0x62   :  { %1730 = vmatpush2.bf16.msra.mxu1 %v2691_v1  ;;  %1688 = vmatprep.subr.bf16.mxu0 %v2692_v2  ;;  %v2767_v1 = vld [vmem:[#allocation5 + $0x3c0] ss:$8 sps:$4 sm:$0xff]   ;;  %v2772_v2 = vld [vmem:[#allocation5 + $0x2b4] ss:$8 sps:$4 sm:$0xff]  }
  0x63   :  { %1731 = vmatprep.subr.bf16.mxu1 %v2694_v3  ;;  %v2775_v3 = vld [vmem:[#allocation5 + $0x3b4] ss:$8 sps:$4 sm:$0xff]  }
  0x65   :  { %1689 = vmatpush2.bf16.msra.mxu0 %v2696_v4  ;;  %v2770_v4 = vld [vmem:[#allocation5 + $0x2b0] ss:$8 sps:$4 sm:$0xff]  }
  0x66   :  { %1732 = vmatpush2.bf16.msra.mxu1 %v2697_v5  ;;  %1744 = vmatprep.subr.bf16.mxu0 %v2700_v10  ;;  %v2773_v5 = vld [vmem:[#allocation5 + $0x3b0] ss:$8 sps:$4 sm:$0xff]   ;;  %v2784_v10 = vld [vmem:[#allocation5 + $0x294] ss:$8 sps:$4 sm:$0xff]  }
  0x67   :  { %1787 = vmatprep.subr.bf16.mxu1 %v2703_v11  ;;  %v2787_v11 = vld [vmem:[#allocation5 + $0x394] ss:$8 sps:$4 sm:$0xff]  }
  0x68   :  { %1691 = vmatmul.mubr.bf16.vlgmr.msra.gmra.mxu0 %v94_v12  ;;  %v2782_v12 = vld [vmem:[#allocation5 + $0x290] ss:$8 sps:$4 sm:$0xff]  }
  0x69   :  { %1734 = vmatmul.mubr.bf16.vlgmr.msra.gmra.mxu1 %v96_v13  ;;  %1745 = vmatpush1.bf16.msra.mxu0 %v2698_v14  ;;  %v2785_v13 = vld [vmem:[#allocation5 + $0x390] ss:$8 sps:$4 sm:$0xff]   ;;  %v2790_v14 = vld [vmem:[#allocation5 + $0x284] ss:$8 sps:$4 sm:$0xff]  }
  0x6a   :  { %1788 = vmatpush1.bf16.msra.mxu1 %v2701_v15  ;;  %1746 = vmatprep.subr.bf16.mxu0 %v2706_v16  ;;  %v2793_v15 = vld [vmem:[#allocation5 + $0x384] ss:$8 sps:$4 sm:$0xff]   ;;  %v2788_v16 = vld [vmem:[#allocation5 + $0x280] ss:$8 sps:$4 sm:$0xff]  }
  0x6b   :  { %1789 = vmatprep.subr.bf16.mxu1 %v2709_v17  ;;  %1776 = vmatprep.mubr.bf16.mxu0 %v99_v45  ;;  %v2791_v17 = vld [vmem:[#allocation5 + $0x380] ss:$8 sps:$4 sm:$0xff]  }
  0x6c   :  { %1819 = vmatprep.mubr.bf16.mxu1 %v101_v47  ;;  %v2815_v45 = vld [vmem:[#allocation5 + $0x540] ss:$8 sps:$4 sm:$0xff]   ;;  %v2823_v47 = vld [vmem:[#allocation5 + $0x534] ss:$8 sps:$4 sm:$0xff]  }
  0x6d   :  { %1747 = vmatpush1.bf16.msra.mxu0 %v2704_v18  ;;  %v66_v18 = vld [vmem:[#allocation2 + $0x20] sm:$0xff] }
  0x6e   :  { %1790 = vmatpush1.bf16.msra.mxu1 %v2707_v19  ;;  %1748 = vmatprep.subr.bf16.mxu0 %v2712_v20  ;;  %v82_v19 = vld [vmem:[#allocation2 + $0xa0] sm:$0xff]  ;;  %v68_v20 = vld [vmem:[#allocation2 + $0x30] sm:$0xff] }
  0x6f   :  { %1791 = vmatprep.subr.bf16.mxu1 %v2715_v21  ;;  %v84_v21 = vld [vmem:[#allocation2 + $0xb0] sm:$0xff] }
  0x71   :  { %1749 = vmatpush1.bf16.msra.mxu0 %v2710_v22  ;;  %v2796_v22 = vld [vmem:[#allocation5 + $0x474] ss:$8 sps:$4 sm:$0xff]  }
  0x72   :  { %1792 = vmatpush1.bf16.msra.mxu1 %v2713_v23  ;;  %1750 = vmatprep.subr.bf16.mxu0 %v2718_v24  ;;  %v2799_v23 = vld [vmem:[#allocation5 + $0x574] ss:$8 sps:$4 sm:$0xff]   ;;  %v98_v24 = vpack.c.bf16 %v82_v19, %v66_v18  ;;  %v2874_v18 = vld [vmem:[#allocation5 + $0x4a4] ss:$8 sps:$4 sm:$0xff]  }
  0x73   :  { %1793 = vmatprep.subr.bf16.mxu1 %v2721_v25  ;;  %v100_v25 = vpack.c.bf16 %v84_v21, %v68_v20  ;;  %v2877_v19 = vld [vmem:[#allocation5 + $0x5a4] ss:$8 sps:$4 sm:$0xff]   ;;  %v2872_v20 = vld [vmem:[#allocation5 + $0x4a0] ss:$8 sps:$4 sm:$0xff]  }
  0x74   :  { %v2875_v21 = vld [vmem:[#allocation5 + $0x5a0] ss:$8 sps:$4 sm:$0xff]  }
  0x75   :  { %1751 = vmatpush1.bf16.msra.mxu0 %v2716_v26  ;;  %v2794_v26 = vld [vmem:[#allocation5 + $0x470] ss:$8 sps:$4 sm:$0xff]  }
  0x76   :  { %1794 = vmatpush1.bf16.msra.mxu1 %v2719_v27  ;;  %1752 = vmatprep.subr.bf16.mxu0 %v2724_v28  ;;  %v2797_v27 = vld [vmem:[#allocation5 + $0x570] ss:$8 sps:$4 sm:$0xff]   ;;  %v2802_v28 = vld [vmem:[#allocation5 + $0x464] ss:$8 sps:$4 sm:$0xff]  }
  0x77   :  { %1795 = vmatprep.subr.bf16.mxu1 %v2727_v29  ;;  %v2805_v29 = vld [vmem:[#allocation5 + $0x564] ss:$8 sps:$4 sm:$0xff]  }
  0x79   :  { %1753 = vmatpush1.bf16.msra.mxu0 %v2722_v30  ;;  %v2800_v30 = vld [vmem:[#allocation5 + $0x460] ss:$8 sps:$4 sm:$0xff]  }
  0x7a   :  { %1796 = vmatpush1.bf16.msra.mxu1 %v2725_v31  ;;  %1754 = vmatprep.subr.bf16.mxu0 %v2730_v32  ;;  %v2803_v31 = vld [vmem:[#allocation5 + $0x560] ss:$8 sps:$4 sm:$0xff]   ;;  %v2808_v32 = vld [vmem:[#allocation5 + $0x454] ss:$8 sps:$4 sm:$0xff]  }
  0x7b   :  { %1797 = vmatprep.subr.bf16.mxu1 %v2733_v33  ;;  %v2811_v33 = vld [vmem:[#allocation5 + $0x554] ss:$8 sps:$4 sm:$0xff]  }
  0x7d   :  { %1755 = vmatpush1.bf16.msra.mxu0 %v2728_v34  ;;  %v71_v34 = vld [vmem:[#allocation2 + $0x48] sm:$0xff] }
  0x7e   :  { %1798 = vmatpush1.bf16.msra.mxu1 %v2731_v35  ;;  %1756 = vmatprep.subr.bf16.mxu0 %v2736_v36  ;;  %v87_v35 = vld [vmem:[#allocation2 + $0xc8] sm:$0xff] }
  0x7f   :  { %1799 = vmatprep.subr.bf16.mxu1 %v2739_v37  ;;  %v103_v36 = vpack.c.bf16 %v87_v35, %v71_v34  ;;  %v73_v37 = vld [vmem:[#allocation2 + $0x58] sm:$0xff] }
  0x80   :  { %v2892_v34 = vld [vmem:[#allocation5 + $0x674] ss:$8 sps:$4 sm:$0xff]  }
  0x81   :  { %1757 = vmatpush1.bf16.msra.mxu0 %v2734_v38  ;;  %v89_v38 = vld [vmem:[#allocation2 + $0xd8] sm:$0xff] }
  0x82   :  { %1800 = vmatpush1.bf16.msra.mxu1 %v2737_v39  ;;  %1758 = vmatprep.subr.bf16.mxu0 %v2742_v43  ;;  %v2806_v39 = vld [vmem:[#allocation5 + $0x450] ss:$8 sps:$4 sm:$0xff]   ;;  %v105_v41 = vpack.c.bf16 %v89_v38, %v73_v37  ;;  %v2817_v43 = vld [vmem:[#allocation5 + $0x544] ss:$8 sps:$4 sm:$0xff]   ;;  %v2895_v35 = vld [vmem:[#allocation5 + $0x774] ss:$8 sps:$4 sm:$0xff]  }
  0x83   :  { %1801 = vmatprep.subr.bf16.mxu1 %v2745_v44  ;;  %v2812_v44 = vld [vmem:[#allocation5 + $0x440] ss:$8 sps:$4 sm:$0xff]   ;;  %v77_v38 = vld [vmem:[#allocation2 + $0x78] sm:$0xff] }
  0x84   :  { %v91_v37 = vld [vmem:[#allocation2 + $0xe8] sm:$0xff] }
  0x85   :  { %1759 = vmatpush1.bf16.msra.mxu0 %v2740_v48  ;;  %v2818_v48 = vld [vmem:[#allocation5 + $0x430] ss:$8 sps:$4 sm:$0xff]  }
  0x86   :  { %1802 = vmatpush1.bf16.msra.mxu1 %v2743_v49  ;;  %1760 = vmatprep.subr.bf16.mxu0 %v2748_v50  ;;  %v2821_v49 = vld [vmem:[#allocation5 + $0x530] ss:$8 sps:$4 sm:$0xff]   ;;  %v2826_v50 = vld [vmem:[#allocation5 + $0x424] ss:$8 sps:$4 sm:$0xff]  }
  0x87   :  { %1803 = vmatprep.subr.bf16.mxu1 %v2751_v51  ;;  %v2829_v51 = vld [vmem:[#allocation5 + $0x524] ss:$8 sps:$4 sm:$0xff]  }
  0x89   :  { %1761 = vmatpush2.bf16.msra.mxu0 %v2746_v52  ;;  %v2824_v52 = vld [vmem:[#allocation5 + $0x420] ss:$8 sps:$4 sm:$0xff]  }
  0x8a   :  { %1804 = vmatpush2.bf16.msra.mxu1 %v2749_v53  ;;  %1762 = vmatprep.subr.bf16.mxu0 %v2754_v54  ;;  %v2827_v53 = vld [vmem:[#allocation5 + $0x520] ss:$8 sps:$4 sm:$0xff]   ;;  %v2832_v54 = vld [vmem:[#allocation5 + $0x414] ss:$8 sps:$4 sm:$0xff]  }
  0x8b   :  { %1805 = vmatprep.subr.bf16.mxu1 %v2757_v55  ;;  %v2835_v55 = vld [vmem:[#allocation5 + $0x514] ss:$8 sps:$4 sm:$0xff]  }
  0x8d   :  { %1763 = vmatpush2.bf16.msra.mxu0 %v2752_v56  ;;  %v2830_v56 = vld [vmem:[#allocation5 + $0x410] ss:$8 sps:$4 sm:$0xff]  }
  0x8e   :  { %1806 = vmatpush2.bf16.msra.mxu1 %v2755_v57  ;;  %1764 = vmatprep.subr.bf16.mxu0 %v2760_v58  ;;  %v2833_v57 = vld [vmem:[#allocation5 + $0x510] ss:$8 sps:$4 sm:$0xff]   ;;  %v2838_v58 = vld [vmem:[#allocation5 + $0x404] ss:$8 sps:$4 sm:$0xff]  }
  0x8f   :  { %1807 = vmatprep.subr.bf16.mxu1 %v2763_v59  ;;  %v2841_v59 = vld [vmem:[#allocation5 + $0x504] ss:$8 sps:$4 sm:$0xff]  }
  0x91   :  { %1765 = vmatpush2.bf16.msra.mxu0 %v2758_v60  ;;  %v2836_v60 = vld [vmem:[#allocation5 + $0x400] ss:$8 sps:$4 sm:$0xff]  }
  0x92   :  { %1808 = vmatpush2.bf16.msra.mxu1 %v2761_v61  ;;  %1766 = vmatprep.subr.bf16.mxu0 %v2766_v62  ;;  %v2839_v61 = vld [vmem:[#allocation5 + $0x500] ss:$8 sps:$4 sm:$0xff]   ;;  %v2844_v62 = vld [vmem:[#allocation5 + $0x4f4] ss:$8 sps:$4 sm:$0xff]  }
  0x93   :  { %1809 = vmatprep.subr.bf16.mxu1 %v2769_v63  ;;  %v2847_v63 = vld [vmem:[#allocation5 + $0x5f4] ss:$8 sps:$4 sm:$0xff]  }
  0x95   :  { %1767 = vmatpush2.bf16.msra.mxu0 %v2764_v0  ;;  %v2842_v0 = vld [vmem:[#allocation5 + $0x4f0] ss:$8 sps:$4 sm:$0xff]  }
  0x96   :  { %1810 = vmatpush2.bf16.msra.mxu1 %v2767_v1  ;;  %1768 = vmatprep.subr.bf16.mxu0 %v2772_v2  ;;  %v2845_v1 = vld [vmem:[#allocation5 + $0x5f0] ss:$8 sps:$4 sm:$0xff]   ;;  %v2850_v2 = vld [vmem:[#allocation5 + $0x4e4] ss:$8 sps:$4 sm:$0xff]  }
  0x97   :  { %1811 = vmatprep.subr.bf16.mxu1 %v2775_v3  ;;  %v2853_v3 = vld [vmem:[#allocation5 + $0x5e4] ss:$8 sps:$4 sm:$0xff]  }
  0x99   :  { %1769 = vmatpush2.bf16.msra.mxu0 %v2770_v4  ;;  %v2848_v4 = vld [vmem:[#allocation5 + $0x4e0] ss:$8 sps:$4 sm:$0xff]  }
  0x9a   :  { %1812 = vmatpush2.bf16.msra.mxu1 %v2773_v5  ;;  %1770 = vmatprep.subr.bf16.mxu0 %v2778_v6  ;;  %v2851_v5 = vld [vmem:[#allocation5 + $0x5e0] ss:$8 sps:$4 sm:$0xff]   ;;  %v2856_v6 = vld [vmem:[#allocation5 + $0x4d4] ss:$8 sps:$4 sm:$0xff]  }
  0x9b   :  { %1813 = vmatprep.subr.bf16.mxu1 %v2781_v7  ;;  %v2859_v7 = vld [vmem:[#allocation5 + $0x5d4] ss:$8 sps:$4 sm:$0xff]  }
  0x9d   :  { %1771 = vmatpush2.bf16.msra.mxu0 %v2776_v8  ;;  %v2854_v8 = vld [vmem:[#allocation5 + $0x4d0] ss:$8 sps:$4 sm:$0xff]  }
  0x9e   :  { %1814 = vmatpush2.bf16.msra.mxu1 %v2779_v9  ;;  %1772 = vmatprep.subr.bf16.mxu0 %v2784_v10  ;;  %v2857_v9 = vld [vmem:[#allocation5 + $0x5d0] ss:$8 sps:$4 sm:$0xff]   ;;  %v2862_v10 = vld [vmem:[#allocation5 + $0x4c4] ss:$8 sps:$4 sm:$0xff]  }
  0x9f   :  { %1815 = vmatprep.subr.bf16.mxu1 %v2787_v11  ;;  %v2865_v11 = vld [vmem:[#allocation5 + $0x5c4] ss:$8 sps:$4 sm:$0xff]  }
  0xa1   :  { %1773 = vmatpush2.bf16.msra.mxu0 %v2782_v12  ;;  %v2860_v12 = vld [vmem:[#allocation5 + $0x4c0] ss:$8 sps:$4 sm:$0xff]  }
  0xa2   :  { %1816 = vmatpush2.bf16.msra.mxu1 %v2785_v13  ;;  %1774 = vmatprep.subr.bf16.mxu0 %v2790_v14  ;;  %v2863_v13 = vld [vmem:[#allocation5 + $0x5c0] ss:$8 sps:$4 sm:$0xff]   ;;  %v2868_v14 = vld [vmem:[#allocation5 + $0x4b4] ss:$8 sps:$4 sm:$0xff]  }
  0xa3   :  { %1817 = vmatprep.subr.bf16.mxu1 %v2793_v15  ;;  %v2871_v15 = vld [vmem:[#allocation5 + $0x5b4] ss:$8 sps:$4 sm:$0xff]  }
  0xa5   :  { %1775 = vmatpush2.bf16.msra.mxu0 %v2788_v16  ;;  %v2866_v16 = vld [vmem:[#allocation5 + $0x4b0] ss:$8 sps:$4 sm:$0xff]  }
  0xa6   :  { %1818 = vmatpush2.bf16.msra.mxu1 %v2791_v17  ;;  %1830 = vmatprep.subr.bf16.mxu0 %v2796_v22  ;;  %v2869_v17 = vld [vmem:[#allocation5 + $0x5b0] ss:$8 sps:$4 sm:$0xff]   ;;  %v2880_v22 = vld [vmem:[#allocation5 + $0x494] ss:$8 sps:$4 sm:$0xff]  }
  0xa7   :  { %1873 = vmatprep.subr.bf16.mxu1 %v2799_v23  ;;  %v2883_v23 = vld [vmem:[#allocation5 + $0x594] ss:$8 sps:$4 sm:$0xff]  }
  0xa8   :  { %1777 = vmatmul.mubr.bf16.vlgmr.msra.gmra.mxu0 %v98_v24  ;;  %v2878_v24 = vld [vmem:[#allocation5 + $0x490] ss:$8 sps:$4 sm:$0xff]  }
  0xa9   :  { %1820 = vmatmul.mubr.bf16.vlgmr.msra.gmra.mxu1 %v100_v25  ;;  %1831 = vmatpush1.bf16.msra.mxu0 %v2794_v26  ;;  %v2881_v25 = vld [vmem:[#allocation5 + $0x590] ss:$8 sps:$4 sm:$0xff]   ;;  %v2886_v26 = vld [vmem:[#allocation5 + $0x484] ss:$8 sps:$4 sm:$0xff]  }
  0xaa   :  { %1874 = vmatpush1.bf16.msra.mxu1 %v2797_v27  ;;  %1832 = vmatprep.subr.bf16.mxu0 %v2802_v28  ;;  %v2889_v27 = vld [vmem:[#allocation5 + $0x584] ss:$8 sps:$4 sm:$0xff]   ;;  %v2884_v28 = vld [vmem:[#allocation5 + $0x480] ss:$8 sps:$4 sm:$0xff]  }
  0xab   :  { %1875 = vmatprep.subr.bf16.mxu1 %v2805_v29  ;;  %1862 = vmatprep.mubr.bf16.mxu0 %v103_v36  ;;  %v2887_v29 = vld [vmem:[#allocation5 + $0x580] ss:$8 sps:$4 sm:$0xff]  }
  0xac   :  { %1905 = vmatprep.mubr.bf16.mxu1 %v105_v41  ;;  %v75_v36 = vld [vmem:[#allocation2 + $0x68] sm:$0xff] }
  0xad   :  { %1833 = vmatpush1.bf16.msra.mxu0 %v2800_v30  ;;  %v70_v30 = vld [vmem:[#allocation2 + $0x40] sm:$0xff] }
  0xae   :  { %1876 = vmatpush1.bf16.msra.mxu1 %v2803_v31  ;;  %1834 = vmatprep.subr.bf16.mxu0 %v2808_v32  ;;  %v86_v31 = vld [vmem:[#allocation2 + $0xc0] sm:$0xff]  ;;  %v72_v32 = vld [vmem:[#allocation2 + $0x50] sm:$0xff] }
  0xaf   :  { %1877 = vmatprep.subr.bf16.mxu1 %v2811_v33  ;;  %v88_v33 = vld [vmem:[#allocation2 + $0xd0] sm:$0xff] }
  0xb0   :  { %v104_v41 = vpack.c.bf16 %v88_v33, %v72_v32  ;;  %v2968_v32 = vld [vmem:[#allocation5 + $0x6a0] ss:$8 sps:$4 sm:$0xff]  }
  0xb1   :  { %1835 = vmatpush1.bf16.msra.mxu0 %v2806_v39  ;;  %v93_v39 = vld [vmem:[#allocation2 + $0xf8] sm:$0xff]  ;;  %v2971_v33 = vld [vmem:[#allocation5 + $0x7a0] ss:$8 sps:$4 sm:$0xff]  }
  0xb2   :  { %1878 = vmatpush1.bf16.msra.mxu1 %v2809_v40  ;;  %1836 = vmatprep.subr.bf16.mxu0 %v2814_v42  ;;  %v102_v40 = vpack.c.bf16 %v86_v31, %v70_v30  ;;  %v2890_v42 = vld [vmem:[#allocation5 + $0x670] ss:$8 sps:$4 sm:$0xff]   ;;  %v2970_v30 = vld [vmem:[#allocation5 + $0x6a4] ss:$8 sps:$4 sm:$0xff]  }
  0xb3   :  { %1879 = vmatprep.subr.bf16.mxu1 %v2817_v43  ;;  %v2893_v43 = vld [vmem:[#allocation5 + $0x770] ss:$8 sps:$4 sm:$0xff]   ;;  %v2973_v31 = vld [vmem:[#allocation5 + $0x7a4] ss:$8 sps:$4 sm:$0xff]  }
  0xb5   :  { %1837 = vmatpush1.bf16.msra.mxu0 %v2812_v44  ;;  %v2898_v44 = vld [vmem:[#allocation5 + $0x664] ss:$8 sps:$4 sm:$0xff]  }
  0xb6   :  { %1880 = vmatpush1.bf16.msra.mxu1 %v2815_v45  ;;  %1838 = vmatprep.subr.bf16.mxu0 %v2820_v46  ;;  %v2901_v45 = vld [vmem:[#allocation5 + $0x764] ss:$8 sps:$4 sm:$0xff]   ;;  %v107_v46 = vpack.c.bf16 %v91_v37, %v75_v36  ;;  %v2974_v36 = vld [vmem:[#allocation5 + $0x690] ss:$8 sps:$4 sm:$0xff]  }
  0xb7   :  { %1881 = vmatprep.subr.bf16.mxu1 %v2823_v47  ;;  %v109_v47 = vpack.c.bf16 %v93_v39, %v77_v38  ;;  %v2977_v37 = vld [vmem:[#allocation5 + $0x790] ss:$8 sps:$4 sm:$0xff]   ;;  %v2982_v38 = vld [vmem:[#allocation5 + $0x684] ss:$8 sps:$4 sm:$0xff]  }
  0xb8   :  { %v2985_v39 = vld [vmem:[#allocation5 + $0x784] ss:$8 sps:$4 sm:$0xff]  }
  0xb9   :  { %1839 = vmatpush1.bf16.msra.mxu0 %v2818_v48  ;;  %v2896_v48 = vld [vmem:[#allocation5 + $0x660] ss:$8 sps:$4 sm:$0xff]  }
  0xba   :  { %1882 = vmatpush1.bf16.msra.mxu1 %v2821_v49  ;;  %1840 = vmatprep.subr.bf16.mxu0 %v2826_v50  ;;  %v2899_v49 = vld [vmem:[#allocation5 + $0x760] ss:$8 sps:$4 sm:$0xff]   ;;  %v2904_v50 = vld [vmem:[#allocation5 + $0x654] ss:$8 sps:$4 sm:$0xff]  }
  0xbb   :  { %1883 = vmatprep.subr.bf16.mxu1 %v2829_v51  ;;  %v2907_v51 = vld [vmem:[#allocation5 + $0x754] ss:$8 sps:$4 sm:$0xff]  }
  0xbd   :  { %1841 = vmatpush1.bf16.msra.mxu0 %v2824_v52  ;;  %v2902_v52 = vld [vmem:[#allocation5 + $0x650] ss:$8 sps:$4 sm:$0xff]  }
  0xbe   :  { %1884 = vmatpush1.bf16.msra.mxu1 %v2827_v53  ;;  %1842 = vmatprep.subr.bf16.mxu0 %v2832_v54  ;;  %v2905_v53 = vld [vmem:[#allocation5 + $0x750] ss:$8 sps:$4 sm:$0xff]   ;;  %v2910_v54 = vld [vmem:[#allocation5 + $0x644] ss:$8 sps:$4 sm:$0xff]  }
  0xbf   :  { %1885 = vmatprep.subr.bf16.mxu1 %v2835_v55  ;;  %v2913_v55 = vld [vmem:[#allocation5 + $0x744] ss:$8 sps:$4 sm:$0xff]  }
  0xc1   :  { %1843 = vmatpush1.bf16.msra.mxu0 %v2830_v56  ;;  %v2908_v56 = vld [vmem:[#allocation5 + $0x640] ss:$8 sps:$4 sm:$0xff]  }
  0xc2   :  { %1886 = vmatpush1.bf16.msra.mxu1 %v2833_v57  ;;  %1844 = vmatprep.subr.bf16.mxu0 %v2838_v58  ;;  %v2911_v57 = vld [vmem:[#allocation5 + $0x740] ss:$8 sps:$4 sm:$0xff]   ;;  %v2916_v58 = vld [vmem:[#allocation5 + $0x634] ss:$8 sps:$4 sm:$0xff]  }
  0xc3   :  { %1887 = vmatprep.subr.bf16.mxu1 %v2841_v59  ;;  %v2919_v59 = vld [vmem:[#allocation5 + $0x734] ss:$8 sps:$4 sm:$0xff]  }
  0xc5   :  { %1845 = vmatpush1.bf16.msra.mxu0 %v2836_v60  ;;  %v2914_v60 = vld [vmem:[#allocation5 + $0x630] ss:$8 sps:$4 sm:$0xff]  }
  0xc6   :  { %1888 = vmatpush1.bf16.msra.mxu1 %v2839_v61  ;;  %1846 = vmatprep.subr.bf16.mxu0 %v2844_v62  ;;  %v2917_v61 = vld [vmem:[#allocation5 + $0x730] ss:$8 sps:$4 sm:$0xff]   ;;  %v2922_v62 = vld [vmem:[#allocation5 + $0x624] ss:$8 sps:$4 sm:$0xff]  }
  0xc7   :  { %1889 = vmatprep.subr.bf16.mxu1 %v2847_v63  ;;  %v2925_v63 = vld [vmem:[#allocation5 + $0x724] ss:$8 sps:$4 sm:$0xff]  }
  0xc9   :  { %1847 = vmatpush2.bf16.msra.mxu0 %v2842_v0  ;;  %v2920_v0 = vld [vmem:[#allocation5 + $0x620] ss:$8 sps:$4 sm:$0xff]  }
  0xca   :  { %1890 = vmatpush2.bf16.msra.mxu1 %v2845_v1  ;;  %1848 = vmatprep.subr.bf16.mxu0 %v2850_v2  ;;  %v2923_v1 = vld [vmem:[#allocation5 + $0x720] ss:$8 sps:$4 sm:$0xff]   ;;  %v2928_v2 = vld [vmem:[#allocation5 + $0x614] ss:$8 sps:$4 sm:$0xff]  }
  0xcb   :  { %1891 = vmatprep.subr.bf16.mxu1 %v2853_v3  ;;  %v2931_v3 = vld [vmem:[#allocation5 + $0x714] ss:$8 sps:$4 sm:$0xff]  }
  0xcd   :  { %1849 = vmatpush2.bf16.msra.mxu0 %v2848_v4  ;;  %v2926_v4 = vld [vmem:[#allocation5 + $0x610] ss:$8 sps:$4 sm:$0xff]  }
  0xce   :  { %1892 = vmatpush2.bf16.msra.mxu1 %v2851_v5  ;;  %1850 = vmatprep.subr.bf16.mxu0 %v2856_v6  ;;  %v2929_v5 = vld [vmem:[#allocation5 + $0x710] ss:$8 sps:$4 sm:$0xff]   ;;  %v2934_v6 = vld [vmem:[#allocation5 + $0x604] ss:$8 sps:$4 sm:$0xff]  }
  0xcf   :  { %1893 = vmatprep.subr.bf16.mxu1 %v2859_v7  ;;  %v2937_v7 = vld [vmem:[#allocation5 + $0x704] ss:$8 sps:$4 sm:$0xff]  }
  0xd1   :  { %1851 = vmatpush2.bf16.msra.mxu0 %v2854_v8  ;;  %v2932_v8 = vld [vmem:[#allocation5 + $0x600] ss:$8 sps:$4 sm:$0xff]  }
  0xd2   :  { %1894 = vmatpush2.bf16.msra.mxu1 %v2857_v9  ;;  %1852 = vmatprep.subr.bf16.mxu0 %v2862_v10  ;;  %v2935_v9 = vld [vmem:[#allocation5 + $0x700] ss:$8 sps:$4 sm:$0xff]   ;;  %v2940_v10 = vld [vmem:[#allocation5 + $0x6f4] ss:$8 sps:$4 sm:$0xff]  }
  0xd3   :  { %1895 = vmatprep.subr.bf16.mxu1 %v2865_v11  ;;  %v2943_v11 = vld [vmem:[#allocation5 + $0x7f4] ss:$8 sps:$4 sm:$0xff]  }
  0xd5   :  { %1853 = vmatpush2.bf16.msra.mxu0 %v2860_v12  ;;  %v2938_v12 = vld [vmem:[#allocation5 + $0x6f0] ss:$8 sps:$4 sm:$0xff]  }
  0xd6   :  { %1896 = vmatpush2.bf16.msra.mxu1 %v2863_v13  ;;  %1854 = vmatprep.subr.bf16.mxu0 %v2868_v14  ;;  %v2941_v13 = vld [vmem:[#allocation5 + $0x7f0] ss:$8 sps:$4 sm:$0xff]   ;;  %v2946_v14 = vld [vmem:[#allocation5 + $0x6e4] ss:$8 sps:$4 sm:$0xff]  }
  0xd7   :  { %1897 = vmatprep.subr.bf16.mxu1 %v2871_v15  ;;  %v2949_v15 = vld [vmem:[#allocation5 + $0x7e4] ss:$8 sps:$4 sm:$0xff]  }
  0xd9   :  { %1855 = vmatpush2.bf16.msra.mxu0 %v2866_v16  ;;  %v2944_v16 = vld [vmem:[#allocation5 + $0x6e0] ss:$8 sps:$4 sm:$0xff]  }
  0xda   :  { %1898 = vmatpush2.bf16.msra.mxu1 %v2869_v17  ;;  %1856 = vmatprep.subr.bf16.mxu0 %v2874_v18  ;;  %v2947_v17 = vld [vmem:[#allocation5 + $0x7e0] ss:$8 sps:$4 sm:$0xff]   ;;  %v2952_v18 = vld [vmem:[#allocation5 + $0x6d4] ss:$8 sps:$4 sm:$0xff]  }
  0xdb   :  { %1899 = vmatprep.subr.bf16.mxu1 %v2877_v19  ;;  %v2955_v19 = vld [vmem:[#allocation5 + $0x7d4] ss:$8 sps:$4 sm:$0xff]  }
  0xdd   :  { %1857 = vmatpush2.bf16.msra.mxu0 %v2872_v20  ;;  %v2950_v20 = vld [vmem:[#allocation5 + $0x6d0] ss:$8 sps:$4 sm:$0xff]  }
  0xde   :  { %1900 = vmatpush2.bf16.msra.mxu1 %v2875_v21  ;;  %1858 = vmatprep.subr.bf16.mxu0 %v2880_v22  ;;  %v2953_v21 = vld [vmem:[#allocation5 + $0x7d0] ss:$8 sps:$4 sm:$0xff]   ;;  %v2958_v22 = vld [vmem:[#allocation5 + $0x6c4] ss:$8 sps:$4 sm:$0xff]  }
  0xdf   :  { %1901 = vmatprep.subr.bf16.mxu1 %v2883_v23  ;;  %v2961_v23 = vld [vmem:[#allocation5 + $0x7c4] ss:$8 sps:$4 sm:$0xff]  }
  0xe1   :  { %1859 = vmatpush2.bf16.msra.mxu0 %v2878_v24  ;;  %v2956_v24 = vld [vmem:[#allocation5 + $0x6c0] ss:$8 sps:$4 sm:$0xff]  }
  0xe2   :  { %1902 = vmatpush2.bf16.msra.mxu1 %v2881_v25  ;;  %1860 = vmatprep.subr.bf16.mxu0 %v2886_v26  ;;  %v2959_v25 = vld [vmem:[#allocation5 + $0x7c0] ss:$8 sps:$4 sm:$0xff]   ;;  %v2964_v26 = vld [vmem:[#allocation5 + $0x6b4] ss:$8 sps:$4 sm:$0xff]  }
  0xe3   :  { %1903 = vmatprep.subr.bf16.mxu1 %v2889_v27  ;;  %v2967_v27 = vld [vmem:[#allocation5 + $0x7b4] ss:$8 sps:$4 sm:$0xff]  }
  0xe5   :  { %1861 = vmatpush2.bf16.msra.mxu0 %v2884_v28  ;;  %v2962_v28 = vld [vmem:[#allocation5 + $0x6b0] ss:$8 sps:$4 sm:$0xff]  }
  0xe6   :  { %1904 = vmatpush2.bf16.msra.mxu1 %v2887_v29  ;;  %1916 = vmatprep.subr.bf16.mxu0 %v2892_v34  ;;  %v2965_v29 = vld [vmem:[#allocation5 + $0x7b0] ss:$8 sps:$4 sm:$0xff]   ;;  %v2976_v34 = vld [vmem:[#allocation5 + $0x694] ss:$8 sps:$4 sm:$0xff]  }
  0xe7   :  { %1959 = vmatprep.subr.bf16.mxu1 %v2895_v35  ;;  %v2979_v35 = vld [vmem:[#allocation5 + $0x794] ss:$8 sps:$4 sm:$0xff]  }
  0xe8   :  { %1863 = vmatmul.mubr.bf16.vlgmr.msra.gmra.mxu0 %v102_v40  ;;  %v2980_v40 = vld [vmem:[#allocation5 + $0x680] ss:$8 sps:$4 sm:$0xff]  }
  0xe9   :  { %1906 = vmatmul.mubr.bf16.vlgmr.msra.gmra.mxu1 %v104_v41  ;;  %1917 = vmatpush1.bf16.msra.mxu0 %v2890_v42  ;;  %v2983_v41 = vld [vmem:[#allocation5 + $0x780] ss:$8 sps:$4 sm:$0xff]  }
  0xea   :  { %1960 = vmatpush1.bf16.msra.mxu1 %v2893_v43  ;;  %1918 = vmatprep.subr.bf16.mxu0 %v2898_v44  ;;  %v74_v42 = vld [vmem:[#allocation2 + $0x60] sm:$0xff]  ;;  %v76_v44 = vld [vmem:[#allocation2 + $0x70] sm:$0xff] }
  0xeb   :  { %1961 = vmatprep.subr.bf16.mxu1 %v2901_v45  ;;  %1948 = vmatprep.mubr.bf16.mxu0 %v107_v46  ;;  %v90_v43 = vld [vmem:[#allocation2 + $0xe0] sm:$0xff]  ;;  %v92_v45 = vld [vmem:[#allocation2 + $0xf0] sm:$0xff] }
  0xec   :  { %1991 = vmatprep.mubr.bf16.mxu1 %v109_v47  ;;  %v106_v46 = vpack.c.bf16 %v90_v43, %v74_v42  ;;  %v108_v47 = vpack.c.bf16 %v92_v45, %v76_v44 }
  0xed   :  { %1919 = vmatpush1.bf16.msra.mxu0 %v2896_v48  ;;  %v2986_v48 = vld [vmem:[#allocation7 + $0x70] ss:$8 sps:$4 sm:$0xff]  }
  0xee   :  { %1962 = vmatpush1.bf16.msra.mxu1 %v2899_v49  ;;  %1920 = vmatprep.subr.bf16.mxu0 %v2904_v50  ;;  %v2988_v49 = vld [vmem:[#allocation7 + $0x74] ss:$8 sps:$4 sm:$0xff]   ;;  %v2991_v50 = vld [vmem:[#allocation7 + $0x64] ss:$8 sps:$4 sm:$0xff]  }
  0xef   :  { %1963 = vmatprep.subr.bf16.mxu1 %v2907_v51  ;;  %v2989_v51 = vld [vmem:[#allocation7 + $0x60] ss:$8 sps:$4 sm:$0xff]  }
  0xf1   :  { %1921 = vmatpush1.bf16.msra.mxu0 %v2902_v52  ;;  %v2994_v52 = vld [vmem:[#allocation7 + $0x54] ss:$8 sps:$4 sm:$0xff]  }
  0xf2   :  { %1964 = vmatpush1.bf16.msra.mxu1 %v2905_v53  ;;  %1922 = vmatprep.subr.bf16.mxu0 %v2910_v54  ;;  %v2992_v53 = vld [vmem:[#allocation7 + $0x50] ss:$8 sps:$4 sm:$0xff]   ;;  %v2997_v54 = vld [vmem:[#allocation7 + $0x44] ss:$8 sps:$4 sm:$0xff]  }
  0xf3   :  { %1965 = vmatprep.subr.bf16.mxu1 %v2913_v55  ;;  %v2995_v55 = vld [vmem:[#allocation7 + $0x40] ss:$8 sps:$4 sm:$0xff]  }
  0xf5   :  { %1923 = vmatpush1.bf16.msra.mxu0 %v2908_v56  ;;  %v3000_v56 = vld [vmem:[#allocation7 + $0x34] ss:$8 sps:$4 sm:$0xff]  }
  0xf6   :  { %1966 = vmatpush1.bf16.msra.mxu1 %v2911_v57  ;;  %1924 = vmatprep.subr.bf16.mxu0 %v2916_v58  ;;  %v2998_v57 = vld [vmem:[#allocation7 + $0x30] ss:$8 sps:$4 sm:$0xff]   ;;  %v3003_v58 = vld [vmem:[#allocation7 + $0x24] ss:$8 sps:$4 sm:$0xff]  }
  0xf7   :  { %1967 = vmatprep.subr.bf16.mxu1 %v2919_v59  ;;  %v3001_v59 = vld [vmem:[#allocation7 + $0x20] ss:$8 sps:$4 sm:$0xff]  }
  0xf9   :  { %1925 = vmatpush1.bf16.msra.mxu0 %v2914_v60  ;;  %v3006_v60 = vld [vmem:[#allocation7 + $0x14] ss:$8 sps:$4 sm:$0xff]  }
  0xfa   :  { %1968 = vmatpush1.bf16.msra.mxu1 %v2917_v61  ;;  %1926 = vmatprep.subr.bf16.mxu0 %v2922_v62  ;;  %v3004_v61 = vld [vmem:[#allocation7 + $0x10] ss:$8 sps:$4 sm:$0xff]   ;;  %v3009_v62 = vld [vmem:[#allocation7 + $0x4] ss:$8 sps:$4 sm:$0xff]  }
  0xfb   :  { %1969 = vmatprep.subr.bf16.mxu1 %v2925_v63  ;;  %v3007_v63 = vld [vmem:[#allocation7] ss:$8 sps:$4 sm:$0xff]  }
  0xfd   :  { %1927 = vmatpush1.bf16.msra.mxu0 %v2920_v0  ;;  %v3012_v0 = vld [vmem:[#allocation7 + $0xf4] ss:$8 sps:$4 sm:$0xff]  }
  0xfe   :  { %1970 = vmatpush1.bf16.msra.mxu1 %v2923_v1  ;;  %1928 = vmatprep.subr.bf16.mxu0 %v2928_v2  ;;  %v3010_v1 = vld [vmem:[#allocation7 + $0xf0] ss:$8 sps:$4 sm:$0xff]   ;;  %v3015_v2 = vld [vmem:[#allocation7 + $0xe4] ss:$8 sps:$4 sm:$0xff]  }
  0xff   :  { %1971 = vmatprep.subr.bf16.mxu1 %v2931_v3  ;;  %v3013_v3 = vld [vmem:[#allocation7 + $0xe0] ss:$8 sps:$4 sm:$0xff]  }
 0x101   :  { %1929 = vmatpush1.bf16.msra.mxu0 %v2926_v4  ;;  %v3018_v4 = vld [vmem:[#allocation7 + $0xd4] ss:$8 sps:$4 sm:$0xff]  }
 0x102   :  { %1972 = vmatpush1.bf16.msra.mxu1 %v2929_v5  ;;  %1930 = vmatprep.subr.bf16.mxu0 %v2934_v6  ;;  %v3016_v5 = vld [vmem:[#allocation7 + $0xd0] ss:$8 sps:$4 sm:$0xff]   ;;  %v3021_v6 = vld [vmem:[#allocation7 + $0xc4] ss:$8 sps:$4 sm:$0xff]  }
 0x103   :  { %1973 = vmatprep.subr.bf16.mxu1 %v2937_v7  ;;  %v3019_v7 = vld [vmem:[#allocation7 + $0xc0] ss:$8 sps:$4 sm:$0xff]  }
 0x105   :  { %1931 = vmatpush1.bf16.msra.mxu0 %v2932_v8  ;;  %v3024_v8 = vld [vmem:[#allocation7 + $0xb4] ss:$8 sps:$4 sm:$0xff]  }
 0x106   :  { %1974 = vmatpush1.bf16.msra.mxu1 %v2935_v9  ;;  %1932 = vmatprep.subr.bf16.mxu0 %v2940_v10  ;;  %v3022_v9 = vld [vmem:[#allocation7 + $0xb0] ss:$8 sps:$4 sm:$0xff]   ;;  %v3027_v10 = vld [vmem:[#allocation7 + $0xa4] ss:$8 sps:$4 sm:$0xff]  }
 0x107   :  { %1975 = vmatprep.subr.bf16.mxu1 %v2943_v11  ;;  %v3025_v11 = vld [vmem:[#allocation7 + $0xa0] ss:$8 sps:$4 sm:$0xff]  }
 0x109   :  { %1933 = vmatpush2.bf16.msra.mxu0 %v2938_v12  ;;  %v3030_v12 = vld [vmem:[#allocation7 + $0x94] ss:$8 sps:$4 sm:$0xff]  }
 0x10a   :  { %1976 = vmatpush2.bf16.msra.mxu1 %v2941_v13  ;;  %1934 = vmatprep.subr.bf16.mxu0 %v2946_v14  ;;  %v3028_v13 = vld [vmem:[#allocation7 + $0x90] ss:$8 sps:$4 sm:$0xff]   ;;  %v3033_v14 = vld [vmem:[#allocation7 + $0x84] ss:$8 sps:$4 sm:$0xff]  }
 0x10b   :  { %1977 = vmatprep.subr.bf16.mxu1 %v2949_v15  ;;  %v3031_v15 = vld [vmem:[#allocation7 + $0x80] ss:$8 sps:$4 sm:$0xff]  }
 0x10d   :  { %1935 = vmatpush2.bf16.msra.mxu0 %v2944_v16 }
 0x10e   :  { %1978 = vmatpush2.bf16.msra.mxu1 %v2947_v17  ;;  %1936 = vmatprep.subr.bf16.mxu0 %v2952_v18 }
 0x10f   :  { %1979 = vmatprep.subr.bf16.mxu1 %v2955_v19 }
 0x111   :  { %1937 = vmatpush2.bf16.msra.mxu0 %v2950_v20 }
 0x112   :  { %1980 = vmatpush2.bf16.msra.mxu1 %v2953_v21  ;;  %1938 = vmatprep.subr.bf16.mxu0 %v2958_v22  ;;  %v368_v22 = vlaneseq }
 0x113   :  { %1981 = vmatprep.subr.bf16.mxu1 %v2961_v23 }
 0x115   :  { %1939 = vmatpush2.bf16.msra.mxu0 %v2956_v24 }
 0x116   :  { %1982 = vmatpush2.bf16.msra.mxu1 %v2959_v25  ;;  %1940 = vmatprep.subr.bf16.mxu0 %v2964_v26  ;;  %v3184_v25 = vshrl.u32 %v368_v22, 7 }
 0x117   :  { %1983 = vmatprep.subr.bf16.mxu1 %v2967_v27 }
 0x119   :  { %1941 = vmatpush2.bf16.msra.mxu0 %v2962_v28  ;;  %v370_v28 = vsub.s32 0, %v3184_v25 }
 0x11a   :  { %1984 = vmatpush2.bf16.msra.mxu1 %v2965_v29  ;;  %1942 = vmatprep.subr.bf16.mxu0 %v2970_v30  ;;  %v366_v29 = vld [vmem:[%s3207_s2] sm:$0x3] }
 0x11b   :  { %1985 = vmatprep.subr.bf16.mxu1 %v2973_v31 }
 0x11d   :  { %1943 = vmatpush2.bf16.msra.mxu0 %v2968_v32  ;;  %v374_v32 = vsub.s32 1, %v3184_v25 }
 0x11e   :  { %1986 = vmatpush2.bf16.msra.mxu1 %v2971_v33  ;;  %1944 = vmatprep.subr.bf16.mxu0 %v2976_v34  ;;  %v371_v33 = vrot.slane %v366_v29, %v370_v28 }
 0x11f   :  { %1987 = vmatprep.subr.bf16.mxu1 %v2979_v35 }
 0x121   :  { %1945 = vmatpush2.bf16.msra.mxu0 %v2974_v36  ;;  %v375_v36 = vrot.slane %v366_v29, %v374_v32 }
 0x122   :  { %1988 = vmatpush2.bf16.msra.mxu1 %v2977_v37  ;;  %1946 = vmatprep.subr.bf16.mxu0 %v2982_v38 }
 0x123   :  { %1989 = vmatprep.subr.bf16.mxu1 %v2985_v39 }
 0x125   :  { %1947 = vmatpush2.bf16.msra.mxu0 %v2980_v40 }
 0x126   :  { %1990 = vmatpush2.bf16.msra.mxu1 %v2983_v41  ;;  %2236 = vmatprep.subr.bf16.mxu0 %v2988_v49 }
 0x128   :  { %1949 = vmatmul.mubr.bf16.vlgmr.msra.gmra.mxu0 %v106_v46  ;;  %v1692_v16 = vpop.f32.mrf.mxu0 }
 0x129   :  { %1992 = vmatmul.mubr.bf16.vlgmr.msra.gmra.mxu1 %v108_v47  ;;  %2237 = vmatpush1.bf16.msra.mxu0 %v2986_v48  ;;  %v1735_v17 = vpop.f32.mrf.mxu1  ;;  %v1693_v37 = vadd.f32 %v1692_v16, %v371_v33 }
 0x12a   :  { %2238 = vmatprep.subr.bf16.mxu0 %v2991_v50  ;;  %v1694_v18 = vpop.f32.mrf.mxu0 }
 0x12b   :  { %v1737_v19 = vpop.f32.mrf.mxu1  ;;  %v1695_v40 = vadd.f32 %v1694_v18, %v375_v36  ;;  %v1736_v43 = vadd.f32 %v1735_v17, %v1693_v37 }
 0x12c   :  { %v1696_v20 = vpop.f32.mrf.mxu0 }
 0x12d   :  { %2239 = vmatpush1.bf16.msra.mxu0 %v2989_v51  ;;  %v1739_v21 = vpop.f32.mrf.mxu1  ;;  %v1697_v44 = vadd.f32 %v1696_v20, %v371_v33  ;;  %v1738_v45 = vadd.f32 %v1737_v19, %v1695_v40 }
 0x12e   :  { %2240 = vmatprep.subr.bf16.mxu0 %v2994_v52  ;;  %v1698_v23 = vpop.f32.mrf.mxu0 }
 0x12f   :  { %v1741_v24 = vpop.f32.mrf.mxu1  ;;  %v1699_v46 = vadd.f32 %v1698_v23, %v375_v36  ;;  %v1740_v50 = vadd.f32 %v1739_v21, %v1697_v44 }
 0x131   :  { %2241 = vmatpush1.bf16.msra.mxu0 %v2992_v53  ;;  %v1742_v52 = vadd.f32 %v1741_v24, %v1699_v46 }
 0x132   :  { %2242 = vmatprep.subr.bf16.mxu0 %v2997_v54 }
 0x135   :  { %2243 = vmatpush1.bf16.msra.mxu0 %v2995_v55 }
 0x136   :  { %2244 = vmatprep.subr.bf16.mxu0 %v3000_v56 }
 0x139   :  { %2245 = vmatpush1.bf16.msra.mxu0 %v2998_v57 }
 0x13a   :  { %2246 = vmatprep.subr.bf16.mxu0 %v3003_v58 }
 0x13d   :  { %2247 = vmatpush1.bf16.msra.mxu0 %v3001_v59 }
 0x13e   :  { %2248 = vmatprep.subr.bf16.mxu0 %v3006_v60 }
 0x141   :  { %2249 = vmatpush1.bf16.msra.mxu0 %v3004_v61 }
 0x142   :  { %2250 = vmatprep.subr.bf16.mxu0 %v3009_v62 }
 0x145   :  { %2251 = vmatpush1.bf16.msra.mxu0 %v3007_v63 }
 0x146   :  { %2252 = vmatprep.subr.bf16.mxu0 %v3012_v0 }
 0x149   :  { %2253 = vmatpush2.bf16.msra.mxu0 %v3010_v1 }
 0x14a   :  { %2254 = vmatprep.subr.bf16.mxu0 %v3015_v2 }
 0x14d   :  { %2255 = vmatpush2.bf16.msra.mxu0 %v3013_v3 }
 0x14e   :  { %2256 = vmatprep.subr.bf16.mxu0 %v3018_v4 }
 0x151   :  { %2257 = vmatpush2.bf16.msra.mxu0 %v3016_v5 }
 0x152   :  { %2258 = vmatprep.subr.bf16.mxu0 %v3021_v6 }
 0x155   :  { %2259 = vmatpush2.bf16.msra.mxu0 %v3019_v7 }
 0x156   :  { %2260 = vmatprep.subr.bf16.mxu0 %v3024_v8 }
 0x159   :  { %2261 = vmatpush2.bf16.msra.mxu0 %v3022_v9 }
 0x15a   :  { %2262 = vmatprep.subr.bf16.mxu0 %v3027_v10 }
 0x15d   :  { %2263 = vmatpush2.bf16.msra.mxu0 %v3025_v11 }
 0x15e   :  { %2264 = vmatprep.subr.bf16.mxu0 %v3030_v12 }
 0x161   :  { %2265 = vmatpush2.bf16.msra.mxu0 %v3028_v13 }
 0x162   :  { %2266 = vmatprep.subr.bf16.mxu0 %v3033_v14 }
 0x165   :  { %2267 = vmatpush2.bf16.msra.mxu0 %v3031_v15 }
 0x168   :  { %v1778_v26 = vpop.f32.mrf.mxu0 }
 0x169   :  { %v1821_v27 = vpop.f32.mrf.mxu1  ;;  %v1779_v47 = vadd.f32 %v1778_v26, %v1736_v43 }
 0x16a   :  { %v1780_v30 = vpop.f32.mrf.mxu0 }
 0x16b   :  { %v1823_v31 = vpop.f32.mrf.mxu1  ;;  %v1781_v51 = vadd.f32 %v1780_v30, %v1738_v45  ;;  %v1822_v53 = vadd.f32 %v1821_v27, %v1779_v47 }
 0x16c   :  { %v1782_v34 = vpop.f32.mrf.mxu0 }
 0x16d   :  { %v1825_v35 = vpop.f32.mrf.mxu1  ;;  %v1783_v54 = vadd.f32 %v1782_v34, %v1740_v50  ;;  %v1824_v57 = vadd.f32 %v1823_v31, %v1781_v51 }
 0x16e   :  { %v1784_v38 = vpop.f32.mrf.mxu0 }
 0x16f   :  { %v1827_v39 = vpop.f32.mrf.mxu1  ;;  %v1785_v58 = vadd.f32 %v1784_v38, %v1742_v52  ;;  %v1826_v60 = vadd.f32 %v1825_v35, %v1783_v54 }
 0x171   :  { %v1828_v0 = vadd.f32 %v1827_v39, %v1785_v58 }
 0x1a8   :  { %v1864_v41 = vpop.f32.mrf.mxu0 }
 0x1a9   :  { %v1907_v42 = vpop.f32.mrf.mxu1  ;;  %v1865_v59 = vadd.f32 %v1864_v41, %v1822_v53 }
 0x1aa   :  { %v1866_v48 = vpop.f32.mrf.mxu0 }
 0x1ab   :  { %v1909_v49 = vpop.f32.mrf.mxu1  ;;  %v1867_v61 = vadd.f32 %v1866_v48, %v1824_v57  ;;  %v1908_v1 = vadd.f32 %v1907_v42, %v1865_v59  ;;  %v2064_v48 = vld [vmem:[%s3209_s4] sm:$0x3]  ;;  %s3110_s4 = scalar_lea.vmem %s2289_s12, 512 }
 0x1ac   :  { %v1868_v55 = vpop.f32.mrf.mxu0  ;;  %v2073_v50 = vrot.slane %v2064_v48, %v374_v32  ;;  %p3111_p1 = scmp.ne.s32.totalorder %s2289_s12, %s3110_s4  ;;  %p3116_p3 = scmp.lt.s32.totalorder %s3110_s4, %s3110_s4 }
 0x1ad   :  { %v1911_v56 = vpop.f32.mrf.mxu1  ;;  %v1869_v2 = vadd.f32 %v1868_v55, %v1826_v60  ;;  %v1910_v5 = vadd.f32 %v1909_v49, %v1867_v61  ;;  %v2069_v49 = vrot.slane %v2064_v48, %v370_v28 }
 0x1ae   :  { %v1870_v62 = vpop.f32.mrf.mxu0  ;;  %p3117_p4 = por %p3116_p3, %p3115_p2 }
 0x1af   :  { %v1913_v63 = vpop.f32.mrf.mxu1  ;;  %v1871_v6 = vadd.f32 %v1870_v62, %v1828_v0  ;;  %v1912_v10 = vadd.f32 %v1911_v56, %v1869_v2 }
 0x1b0   :  { %p3118_p5 = pnand %p3117_p4, %p3111_p1 }
 0x1b1   :  { %v1914_v15 = vadd.f32 %v1913_v63, %v1871_v6 }
 0x1e8   :  { %v1950_v3 = vpop.f32.mrf.mxu0 }
 0x1e9   :  { %v1993_v4 = vpop.f32.mrf.mxu1  ;;  %v1951_v7 = vadd.f32 %v1950_v3, %v1908_v1 }
 0x1ea   :  { %v1952_v8 = vpop.f32.mrf.mxu0 }
 0x1eb   :  { %v1995_v9 = vpop.f32.mrf.mxu1  ;;  %v1994_v11 = vadd.f32 %v1993_v4, %v1951_v7  ;;  %v1953_v12 = vadd.f32 %v1952_v8, %v1910_v5 }
 0x1ec   :  { %v1954_v13 = vpop.f32.mrf.mxu0 }
 0x1ed   :  { %v1997_v14 = vpop.f32.mrf.mxu1  ;;  %v2557_v16 = vmul.f32 -1.442695, %v1994_v11  ;;  %v1996_v17 = vadd.f32 %v1995_v9, %v1953_v12  ;;  %v1955_v18 = vadd.f32 %v1954_v13, %v1912_v10 }
 0x1ee   :  { %v1956_v19 = vpop.f32.mrf.mxu0 }
 0x1ef   :  { %v2558_v20 = vmul.f32 -1.442695, %v1996_v17  ;;  %v1998_v21 = vadd.f32 %v1997_v14, %v1955_v18  ;;  %v1957_v22 = vadd.f32 %v1956_v19, %v1914_v15  ;;  %3034 = vpow2.f32 %v2557_v16  ;;  %v1999_v23 = vpop.f32.mrf.mxu1 }
 0x1f1   :  { %3036 = vpow2.f32 %v2558_v20  ;;  %v2559_v24 = vmul.f32 -1.442695, %v1998_v21  ;;  %v2000_v26 = vadd.f32 %v1999_v23, %v1957_v22 }
 0x1f3   :  { %3038 = vpow2.f32 %v2559_v24  ;;  %v2560_v27 = vmul.f32 -1.442695, %v2000_v26 }
 0x1f5   :  { %3040 = vpow2.f32 %v2560_v27 }
 0x1fc   :  { %v3035_v29 = vpop.eup %3034 }
 0x1fd   :  { %v2014_v34 = vadd.f32 1.0, %v3035_v29 }
 0x1fe   :  { %v3037_v30 = vpop.eup %3036 }
 0x1ff   :  { %v2015_v31 = vadd.f32 1.0, %v3037_v30 }
 0x200   :  { %v3039_v33 = vpop.eup %3038 }
 0x201   :  { %v2016_v35 = vadd.f32 1.0, %v3039_v33  ;;  %3042 = vrcp.f32 %v2015_v31 }
 0x202   :  { %v3041_v36 = vpop.eup %3040 }
 0x203   :  { %3044 = vrcp.f32 %v2016_v35  ;;  %v2017_v37 = vadd.f32 1.0, %v3041_v36 }
 0x204   :  { %3046 = vrcp.f32 %v2014_v34 }
 0x205   :  { %3048 = vrcp.f32 %v2017_v37 }
 0x20e   :  { %v3043_v38 = vpop.eup %3042 }
 0x20f   :  { %v2027_v43 = vmul.f32 %v3043_v38, %v1996_v17 }
 0x210   :  { %v3045_v39 = vpop.eup %3044 }
 0x211   :  { %v3047_v40 = vpop.eup %3046  ;;  %v2028_v42 = vmul.f32 %v3045_v39, %v1998_v21 }
 0x212   :  { %v3049_v41 = vpop.eup %3048  ;;  %v2026_v45 = vmul.f32 %v3047_v40, %v1994_v11 }
 0x213   :  { %v2029_v44 = vmul.f32 %v3049_v41, %v2000_v26 }
 0x214   :  { %v2030_v47 = vpack.c.bf16 %v2028_v42, %v2026_v45 }
 0x215   :  { %v2031_v46 = vpack.c.bf16 %v2029_v44, %v2027_v43 }
 0x217   :  { %2268 = vmatprep.mubr.bf16.mxu0 %v2031_v46 }
 0x218   :  { %2269 = vmatmul.mubr.bf16.vlgmr.msra.gmra.mxu0 %v2030_v47 }
 0x2d8   :  { %v2270_v51 = vpop.f32.mrf.mxu0 }
 0x2d9   :  { %v2271_v52 = vadd.f32 %v2270_v51, %v2069_v49 }
 0x2da   :  { %v2272_v53 = vpop.f32.mrf.mxu0 }
 0x2db   :  { %2279 = vst [vmem:[#allocation8] sm:$0xff] %v2271_v52  ;;  %v2273_v54 = vadd.f32 %v2272_v53, %v2073_v50 }
 0x2dc   :  { %v2274_v55 = vpop.f32.mrf.mxu0 }
 0x2dd   :  { %2280 = vst [vmem:[#allocation8 + $0x8] sm:$0xff] %v2273_v54  ;;  %v2275_v56 = vadd.f32 %v2274_v55, %v2069_v49 }
 0x2de   :  { %v2276_v57 = vpop.f32.mrf.mxu0 }
 0x2df   :  { %2281 = vst [vmem:[#allocation8 + $0x10] sm:$0xff] %v2275_v56  ;;  %v2277_v58 = vadd.f32 %v2276_v57, %v2073_v50 }
 0x2e1   :  { %2282 = vst [vmem:[#allocation8 + $0x18] sm:$0xff] %v2277_v58 }
 0x2e2   :  { %3121 = shalt.err (!%p3118_p5)
}
 0x2e3   :  { %s3143_s13 = smov 256   ;;  %s3144_s14 = smov 16  }
 0x2e4   :  { %2294 = dma.vmem_to_hbm [thread:$0]  %s2289_s12, 512, %s3210_s5, [#allocation4], %s3143_s13, %s3143_s13, %s3144_s14  }
 0x2e5   :  { %3134 = dma.done.wait [#allocation4], 512  }
 0x2e6   :  { %3135 = vsyncadd [#allocation4], 4294966784 }
 0x2e7   :  { %2298 = vsyncpa [#allocation3], 1 }
 0x2e8   :  { %2299 = vsyncpa [#allocation6], 1 }
 0x2e9   :  { %2300 = vsyncpa [#allocation4], 1 }

</bundles_post_ra>
